<compile_context>
chip_gen: v7x
topology: tpu7x:2x2x1
jax: 0.10.0
libtpu: 0.0.40
codegen_flags: <defaults>
</compile_context>

<pallas_src>
import functools
import math

import jax
import jax.numpy as jnp
from jax.experimental import pallas as pl
from jax.experimental.pallas import tpu as pltpu

# --- small synthetic RoBERTa-like config -------------------------------------
VOCAB = 100
MAX_POS = 32
HIDDEN = 32
NUM_LAYERS = 2
NUM_HEADS = 4
HEAD_DIM = HIDDEN // NUM_HEADS
INTERMEDIATE = 64
LN_EPS = 1e-5  # roberta-base layer_norm_eps


def _gelu(x):
    # tanh-approximate GELU (EUP-friendly).
    # TODO(synk): exact erf-based GELU if bit-exact match to HF RoBERTa is needed.
    c = math.sqrt(2.0 / math.pi)
    return 0.5 * x * (1.0 + jnp.tanh(c * (x + 0.044715 * x * x * x)))


def encoder_kernel(seq_len, has_mask, *refs):
    """One transformer layer per grid step; x carried in VMEM scratch.

    Activations are flattened to (rows, H) = (B_tile*S, H).
    """
    if has_mask:
        (x_ref, bias_ref, embln_ref, wqkv_ref, bqkv_ref, wo_ref,
         wi_ref, bi_ref, wf_ref, vec_ref, out_ref, x_sc) = refs
    else:
        (x_ref, embln_ref, wqkv_ref, bqkv_ref, wo_ref,
         wi_ref, bi_ref, wf_ref, wvec_ref, out_ref, x_sc) = refs[:11]
        vec_ref = wvec_ref
        bias_ref = None

    l = pl.program_id(1)                                      # layer index
    rows = x_ref.shape[0]
    b_tile = rows // seq_len
    scale = 1.0 / math.sqrt(HEAD_DIM)

    def layer_norm(h, g, b):  # h: (rows, X); g, b: (1, X)
        mu = jnp.mean(h, axis=-1, keepdims=True)
        var = jnp.mean((h - mu) ** 2, axis=-1, keepdims=True)
        return (h - mu) * jax.lax.rsqrt(var + LN_EPS) * g + b

    # --- embedding LayerNorm, only at the first layer step (carry init) ---
    @pl.when(l == 0)
    def _():
        x0 = x_ref[...].astype(jnp.float32)                   # (rows, H)
        x_sc[...] = layer_norm(x0, embln_ref[0:1, :], embln_ref[1:2, :])

    x = x_sc[...]                                             # (rows, H) f32

    vec_l = vec_ref[0]                                        # (6, H) f32
    bo, bf_ = vec_l[0:1], vec_l[1:2]
    g1, b1 = vec_l[2:3], vec_l[3:4]
    g2, b2 = vec_l[4:5], vec_l[5:6]

    # --- fused Q/K/V projection: one (rows, H) @ (H, 3H) MXU matmul ---
    qkv = jnp.dot(x.astype(jnp.bfloat16), wqkv_ref[0],
                  preferred_element_type=jnp.float32) + bqkv_ref[0]
    # one f32->bf16 cast + one (view-like) leading-dim reshape per layer
    qkv_bf = qkv.astype(jnp.bfloat16).reshape(b_tile, seq_len, 3 * HIDDEN)

    def gather_heads(base):
        # heads folded into the einsum batch dim: (NUM_HEADS * b_tile, S, HD)
        return jnp.concatenate(
            [qkv_bf[:, :, base + h * HEAD_DIM: base + (h + 1) * HEAD_DIM]
             for h in range(NUM_HEADS)], axis=0)

    qh = gather_heads(0)
    kh = gather_heads(HIDDEN)
    vh = gather_heads(2 * HIDDEN)

    # --- multi-head self-attention: one batched score matmul + ONE softmax ---
    s = jnp.einsum('bqd,bkd->bqk', qh, kh,
                   preferred_element_type=jnp.float32) * scale   # (NH*b, S, S)
    if has_mask:
        s = s + jnp.concatenate([bias_ref[...]] * NUM_HEADS, axis=0)  # mask keys
    s = s - jnp.max(s, axis=-1, keepdims=True)
    p = jnp.exp(s)
    p = p * pl.reciprocal(jnp.sum(p, axis=-1, keepdims=True), approx=True)

    ctx = jnp.einsum('bqk,bkd->bqd', p.astype(jnp.bfloat16), vh,
                     preferred_element_type=jnp.float32)         # (NH*b, S, HD)
    # reassemble heads on the lane axis (cheap 8-lane concat), then ONE output
    # projection against the unsplit (H, H) weight.
    ctx = jnp.concatenate(
        [ctx[h * b_tile:(h + 1) * b_tile] for h in range(NUM_HEADS)],
        axis=-1)                                                 # (b, S, H)
    attn = jnp.dot(ctx.reshape(rows, HIDDEN).astype(jnp.bfloat16), wo_ref[0],
                   preferred_element_type=jnp.float32) + bo

    x = layer_norm(x + attn, g1, b1)

    # --- feed-forward ---
    hmid = jnp.dot(x.astype(jnp.bfloat16), wi_ref[0],
                   preferred_element_type=jnp.float32) + bi_ref[0]
    hmid = _gelu(hmid)
    ff = jnp.dot(hmid.astype(jnp.bfloat16), wf_ref[0],
                 preferred_element_type=jnp.float32) + bf_
    x = layer_norm(x + ff, g2, b2)

    x_sc[...] = x                                               # carry to next layer

    @pl.when(l == pl.num_programs(1) - 1)
    def _():
        out_ref[...] = x.astype(out_ref.dtype)


def init_params(key):
    std = 0.02
    ks = jax.random.split(key, 9)

    def nrm(k, shape):
        return jax.random.normal(k, shape, jnp.float32) * std

    wq = nrm(ks[3], (NUM_LAYERS, HIDDEN, HIDDEN))
    wk = nrm(ks[4], (NUM_LAYERS, HIDDEN, HIDDEN))
    wv = nrm(ks[5], (NUM_LAYERS, HIDDEN, HIDDEN))
    wo = nrm(ks[6], (NUM_LAYERS, HIDDEN, HIDDEN))
    wi = nrm(ks[7], (NUM_LAYERS, HIDDEN, INTERMEDIATE))
    wf = nrm(ks[8], (NUM_LAYERS, INTERMEDIATE, HIDDEN))

    zH = jnp.zeros((NUM_LAYERS, HIDDEN), jnp.float32)
    oH = jnp.ones((NUM_LAYERS, HIDDEN), jnp.float32)

    return {
        # embedding tables (gather stays in plain JAX)
        "word_emb": nrm(ks[0], (VOCAB, HIDDEN)),
        "pos_emb": nrm(ks[1], (MAX_POS, HIDDEN)),
        "tok_type_emb": nrm(ks[2], (1, HIDDEN)),
        # packed / consolidated kernel inputs (leading dim = layer, streamed)
        "emb_ln": jnp.stack([jnp.ones((HIDDEN,), jnp.float32),
                             jnp.zeros((HIDDEN,), jnp.float32)], axis=0),      # (2, H)
        "w_qkv": jnp.concatenate([wq, wk, wv], axis=-1).astype(jnp.bfloat16),  # (L, H, 3H)
        "b_qkv": jnp.zeros((NUM_LAYERS, 1, 3 * HIDDEN), jnp.float32),          # (L, 1, 3H)
        "wo": wo.astype(jnp.bfloat16),                                         # (L, H, H) unsplit
        "wi": wi.astype(jnp.bfloat16),                                         # (L, H, I)
        "bi": jnp.zeros((NUM_LAYERS, 1, INTERMEDIATE), jnp.float32),           # (L, 1, I)
        "wf": wf.astype(jnp.bfloat16),                                         # (L, I, H)
        # per-layer H-sized vectors, packed: [bo, bf, ln1_g, ln1_b, ln2_g, ln2_b]
        "vec": jnp.stack([zH, zH, oH, zH, oH, zH], axis=1),                    # (L, 6, H)
    }


def target_encoder_forward(params, input_ids, attention_mask=None, batch_splits=1):
    """Forward pass: input_ids [B, S] -> hidden_states [B, S, HIDDEN].

    Grid is (batch_splits, NUM_LAYERS): the layer axis is "arbitrary" and
    streams per-layer weights through VMEM while x is carried in scratch.
    batch_splits is only honored when each core gets enough rows (>= 512) to
    hide per-step overhead + duplicate weight DMA (v7x two-TC sharding).
    """
    B, S = input_ids.shape

    # Embedding gathers (glue, plain JAX)
    pos_ids = jnp.arange(S)
    emb = (
        params["word_emb"][input_ids]
        + params["pos_emb"][pos_ids][None, :, :]
        + params["tok_type_emb"][0][None, None, :]
    ).astype(jnp.float32)
    x = emb.reshape(B * S, HIDDEN)                            # (B*S, H)

    has_mask = attention_mask is not None

    # Gate batch_splits on real per-core work (perf review, v7x item).
    G = 1
    if batch_splits > 1 and B % batch_splits == 0 and (B // batch_splits) * S >= 512:
        G = batch_splits
    rows = (B // G) * S

    in_specs = [pl.BlockSpec((rows, HIDDEN), lambda i, l: (i, 0))]
    args = [x]
    if has_mask:
        bias = ((1.0 - attention_mask.astype(jnp.float32)) * -1e9).reshape(B, 1, S)
        in_specs.append(pl.BlockSpec((B // G, 1, S), lambda i, l: (i, 0, 0)))
        args.append(bias)

    # Embedding LN params are constant across layer steps.
    in_specs.append(pl.BlockSpec((2, HIDDEN), lambda i, l: (0, 0)))
    args.append(params["emb_ln"])

    def layer_spec(arr):
        nd = arr.ndim
        return pl.BlockSpec((1,) + arr.shape[1:],
                            lambda i, l, nd=nd: (l,) + (0,) * (nd - 1))

    # Per-layer weights streamed along the layer grid axis (double-buffered by
    # the Pallas pipeline; caps resident weights at ~2 layers for big configs).
    for name in ("w_qkv", "b_qkv", "wo", "wi", "bi", "wf", "vec"):
        arr = params[name]
        in_specs.append(layer_spec(arr))
        args.append(arr)

    out = pl.pallas_call(
        functools.partial(encoder_kernel, S, has_mask),
        out_shape=jax.ShapeDtypeStruct((B * S, HIDDEN), jnp.float32),
        grid=(G, NUM_LAYERS),
        in_specs=in_specs,
        out_specs=pl.BlockSpec((rows, HIDDEN), lambda i, l: (i, 0)),
        scratch_shapes=[pltpu.VMEM((rows, HIDDEN), jnp.float32)],   # x carry
        compiler_params=pltpu.CompilerParams(
            dimension_semantics=("parallel", "arbitrary"),
            # Explicit headroom (review item); usage is tiny thanks to layer
            # streaming, and 32 MiB is within every generation's physical VMEM.
            vmem_limit_bytes=32 * 1024 * 1024,
        ),
    )(*args)
    return out.reshape(B, S, HIDDEN)


if __name__ == "__main__":
    key = jax.random.PRNGKey(0)
    k_param, k_ids = jax.random.split(key)

    params = init_params(k_param)

    B, S = 2, 8
    input_ids = jax.random.randint(k_ids, (B, S), 0, VOCAB, dtype=jnp.int32)
    # attention_mask defaults to ones (same as the PyTorch forward); the
    # no-mask kernel variant is mathematically identical to an all-ones mask.
    hidden_states = target_encoder_forward(params, input_ids, attention_mask=None)
    hidden_states = jax.block_until_ready(hidden_states)

    assert hidden_states.shape == (B, S, HIDDEN)
    assert hidden_states.dtype == jnp.float32
    print("KERNEL_OK")
</pallas_src>

<mosaic_0001>
module attributes {stable_mosaic.version = 11 : i64} {
  func.func @encoder_kernel(%arg0: i32, %arg1: i32, %arg2: memref<16x32xf32, #tpu.memory_space<vmem>>, %arg3: memref<2x32xf32, #tpu.memory_space<vmem>>, %arg4: memref<1x32x96xbf16, #tpu.memory_space<vmem>>, %arg5: memref<1x1x96xf32, #tpu.memory_space<vmem>>, %arg6: memref<1x32x32xbf16, #tpu.memory_space<vmem>>, %arg7: memref<1x32x64xbf16, #tpu.memory_space<vmem>>, %arg8: memref<1x1x64xf32, #tpu.memory_space<vmem>>, %arg9: memref<1x64x32xbf16, #tpu.memory_space<vmem>>, %arg10: memref<1x6x32xf32, #tpu.memory_space<vmem>>, %arg11: memref<16x32xf32, #tpu.memory_space<vmem>>, %arg12: memref<16x32xf32, #tpu.memory_space<vmem>>) attributes {dimension_semantics = [#tpu.dimension_semantics<parallel>, #tpu.dimension_semantics<arbitrary>], iteration_bounds = array<i64: 1, 2>, scalar_prefetch = 0 : i64, scratch_operands = 1 : i64, tpu.core_type = #tpu.core_type<tc>, window_params = [{transform_indices = @transform_0, window_bounds = array<i64: 16, 32>}, {pipeline_mode = #tpu.pipeline_mode<synchronous>, transform_indices = @transform_1, window_bounds = array<i64: 2, 32>}, {transform_indices = @transform_2, window_bounds = array<i64: 1, 32, 96>}, {transform_indices = @transform_3, window_bounds = array<i64: 1, 1, 96>}, {transform_indices = @transform_4, window_bounds = array<i64: 1, 32, 32>}, {transform_indices = @transform_5, window_bounds = array<i64: 1, 32, 64>}, {transform_indices = @transform_6, window_bounds = array<i64: 1, 1, 64>}, {transform_indices = @transform_7, window_bounds = array<i64: 1, 64, 32>}, {transform_indices = @transform_8, window_bounds = array<i64: 1, 6, 32>}, {transform_indices = @transform_9, window_bounds = array<i64: 16, 32>}]} {
    %c0_i32 = arith.constant 0 : i32
    %0 = arith.cmpi eq, %arg1, %c0_i32 : i32
    %1 = arith.extui %0 : i1 to i32
    %c0_i32_0 = arith.constant 0 : i32
    %2 = arith.cmpi ne, %1, %c0_i32_0 : i32
    scf.if %2 {
      %c0_48 = arith.constant 0 : index
      %c0_49 = arith.constant 0 : index
      %141 = vector.load %arg2[%c0_48, %c0_49] : memref<16x32xf32, #tpu.memory_space<vmem>>, vector<16x32xf32>
      %c0_50 = arith.constant 0 : index
      %c0_51 = arith.constant 0 : index
      %142 = vector.load %arg3[%c0_50, %c0_51] : memref<2x32xf32, #tpu.memory_space<vmem>>, vector<1x32xf32>
      %c1 = arith.constant 1 : index
      %c0_52 = arith.constant 0 : index
      %143 = vector.load %arg3[%c1, %c0_52] : memref<2x32xf32, #tpu.memory_space<vmem>>, vector<1x32xf32>
      %cst_53 = arith.constant dense<0.000000e+00> : vector<16xf32>
      %144 = vector.multi_reduction <add>, %141, %cst_53 [1] : vector<16x32xf32> to vector<16xf32>
      %145 = vector.shape_cast %144 : vector<16xf32> to vector<16x1xf32>
      %cst_54 = arith.constant 3.200000e+01 : f32
      %146 = vector.broadcast %cst_54 : f32 to vector<16x1xf32>
      %147 = arith.divf %145, %146 : vector<16x1xf32>
      %148 = vector.broadcast %147 : vector<16x1xf32> to vector<16x32xf32>
      %149 = arith.subf %141, %148 : vector<16x32xf32>
      %150 = arith.mulf %149, %149 : vector<16x32xf32>
      %cst_55 = arith.constant dense<0.000000e+00> : vector<16xf32>
      %151 = vector.multi_reduction <add>, %150, %cst_55 [1] : vector<16x32xf32> to vector<16xf32>
      %152 = vector.shape_cast %151 : vector<16xf32> to vector<16x1xf32>
      %cst_56 = arith.constant 3.200000e+01 : f32
      %153 = vector.broadcast %cst_56 : f32 to vector<16x1xf32>
      %154 = arith.divf %152, %153 : vector<16x1xf32>
      %155 = vector.broadcast %147 : vector<16x1xf32> to vector<16x32xf32>
      %156 = arith.subf %141, %155 : vector<16x32xf32>
      %cst_57 = arith.constant 9.99999974E-6 : f32
      %157 = vector.broadcast %cst_57 : f32 to vector<16x1xf32>
      %158 = arith.addf %154, %157 : vector<16x1xf32>
      %159 = math.rsqrt %158 : vector<16x1xf32>
      %160 = vector.broadcast %159 : vector<16x1xf32> to vector<16x32xf32>
      %161 = arith.mulf %156, %160 : vector<16x32xf32>
      %162 = vector.broadcast %142 : vector<1x32xf32> to vector<16x32xf32>
      %163 = arith.mulf %161, %162 : vector<16x32xf32>
      %164 = vector.broadcast %143 : vector<1x32xf32> to vector<16x32xf32>
      %165 = arith.addf %163, %164 : vector<16x32xf32>
      %c0_58 = arith.constant 0 : index
      %c0_59 = arith.constant 0 : index
      %166 = vector.load %arg12[%c0_58, %c0_59] : memref<16x32xf32, #tpu.memory_space<vmem>>, vector<16x32xf32>
      tpu.vector_store %arg12[%c0_58, %c0_59], %165 {strides = array<i32>} : memref<16x32xf32, #tpu.memory_space<vmem>>, vector<16x32xf32>,
    } else {
    }
    %c0 = arith.constant 0 : index
    %c0_1 = arith.constant 0 : index
    %3 = vector.load %arg12[%c0, %c0_1] : memref<16x32xf32, #tpu.memory_space<vmem>>, vector<16x32xf32>
    %c0_2 = arith.constant 0 : index
    %c0_3 = arith.constant 0 : index
    %c0_4 = arith.constant 0 : index
    %4 = vector.load %arg10[%c0_2, %c0_3, %c0_4] : memref<1x6x32xf32, #tpu.memory_space<vmem>>, vector<1x6x32xf32>
    %5 = vector.shape_cast %4 : vector<1x6x32xf32> to vector<6x32xf32>
    %6 = vector.extract_strided_slice %5 {offsets = [0, 0], sizes = [1, 32], strides = [1, 1]} : vector<6x32xf32> to vector<1x32xf32>
    %7 = vector.extract_strided_slice %5 {offsets = [1, 0], sizes = [1, 32], strides = [1, 1]} : vector<6x32xf32> to vector<1x32xf32>
    %8 = vector.extract_strided_slice %5 {offsets = [2, 0], sizes = [1, 32], strides = [1, 1]} : vector<6x32xf32> to vector<1x32xf32>
    %9 = vector.extract_strided_slice %5 {offsets = [3, 0], sizes = [1, 32], strides = [1, 1]} : vector<6x32xf32> to vector<1x32xf32>
    %10 = vector.extract_strided_slice %5 {offsets = [4, 0], sizes = [1, 32], strides = [1, 1]} : vector<6x32xf32> to vector<1x32xf32>
    %11 = vector.extract_strided_slice %5 {offsets = [5, 0], sizes = [1, 32], strides = [1, 1]} : vector<6x32xf32> to vector<1x32xf32>
    %12 = arith.truncf %3 : vector<16x32xf32> to vector<16x32xbf16>
    %c0_5 = arith.constant 0 : index
    %c0_6 = arith.constant 0 : index
    %c0_7 = arith.constant 0 : index
    %13 = vector.load %arg4[%c0_5, %c0_6, %c0_7] : memref<1x32x96xbf16, #tpu.memory_space<vmem>>, vector<1x32x96xbf16>
    %14 = vector.shape_cast %13 : vector<1x32x96xbf16> to vector<32x96xbf16>
    %cst = arith.constant dense<0.000000e+00> : vector<16x96xf32>
    %15 = tpu.matmul %12, %14, %cst {dimension_numbers = #tpu.dot_dimension_numbers<[1], [0], [0], [1], [0, 0, 1, 1], [], []>} : vector<16x32xbf16>, vector<32x96xbf16>, vector<16x96xf32> -> vector<16x96xf32>
    %c0_8 = arith.constant 0 : index
    %c0_9 = arith.constant 0 : index
    %c0_10 = arith.constant 0 : index
    %16 = vector.load %arg5[%c0_8, %c0_9, %c0_10] : memref<1x1x96xf32, #tpu.memory_space<vmem>>, vector<1x1x96xf32>
    %17 = vector.shape_cast %16 : vector<1x1x96xf32> to vector<1x96xf32>
    %18 = vector.broadcast %17 : vector<1x96xf32> to vector<16x96xf32>
    %19 = arith.addf %15, %18 : vector<16x96xf32>
    %20 = arith.truncf %19 : vector<16x96xf32> to vector<16x96xbf16>
    %21 = vector.shape_cast %20 : vector<16x96xbf16> to vector<2x8x96xbf16>
    %22 = vector.extract_strided_slice %21 {offsets = [0, 0, 0], sizes = [2, 8, 8], strides = [1, 1, 1]} : vector<2x8x96xbf16> to vector<2x8x8xbf16>
    %23 = vector.extract_strided_slice %21 {offsets = [0, 0, 8], sizes = [2, 8, 8], strides = [1, 1, 1]} : vector<2x8x96xbf16> to vector<2x8x8xbf16>
    %24 = vector.extract_strided_slice %21 {offsets = [0, 0, 16], sizes = [2, 8, 8], strides = [1, 1, 1]} : vector<2x8x96xbf16> to vector<2x8x8xbf16>
    %25 = vector.extract_strided_slice %21 {offsets = [0, 0, 24], sizes = [2, 8, 8], strides = [1, 1, 1]} : vector<2x8x96xbf16> to vector<2x8x8xbf16>
    %26 = tpu.concatenate %22, %23, %24, %25 in 0 : vector<2x8x8xbf16>, vector<2x8x8xbf16>, vector<2x8x8xbf16>, vector<2x8x8xbf16> -> vector<8x8x8xbf16>
    %27 = vector.extract_strided_slice %21 {offsets = [0, 0, 32], sizes = [2, 8, 8], strides = [1, 1, 1]} : vector<2x8x96xbf16> to vector<2x8x8xbf16>
    %28 = vector.extract_strided_slice %21 {offsets = [0, 0, 40], sizes = [2, 8, 8], strides = [1, 1, 1]} : vector<2x8x96xbf16> to vector<2x8x8xbf16>
    %29 = vector.extract_strided_slice %21 {offsets = [0, 0, 48], sizes = [2, 8, 8], strides = [1, 1, 1]} : vector<2x8x96xbf16> to vector<2x8x8xbf16>
    %30 = vector.extract_strided_slice %21 {offsets = [0, 0, 56], sizes = [2, 8, 8], strides = [1, 1, 1]} : vector<2x8x96xbf16> to vector<2x8x8xbf16>
    %31 = tpu.concatenate %27, %28, %29, %30 in 0 : vector<2x8x8xbf16>, vector<2x8x8xbf16>, vector<2x8x8xbf16>, vector<2x8x8xbf16> -> vector<8x8x8xbf16>
    %32 = vector.extract_strided_slice %21 {offsets = [0, 0, 64], sizes = [2, 8, 8], strides = [1, 1, 1]} : vector<2x8x96xbf16> to vector<2x8x8xbf16>
    %33 = vector.extract_strided_slice %21 {offsets = [0, 0, 72], sizes = [2, 8, 8], strides = [1, 1, 1]} : vector<2x8x96xbf16> to vector<2x8x8xbf16>
    %34 = vector.extract_strided_slice %21 {offsets = [0, 0, 80], sizes = [2, 8, 8], strides = [1, 1, 1]} : vector<2x8x96xbf16> to vector<2x8x8xbf16>
    %35 = vector.extract_strided_slice %21 {offsets = [0, 0, 88], sizes = [2, 8, 8], strides = [1, 1, 1]} : vector<2x8x96xbf16> to vector<2x8x8xbf16>
    %36 = tpu.concatenate %32, %33, %34, %35 in 0 : vector<2x8x8xbf16>, vector<2x8x8xbf16>, vector<2x8x8xbf16>, vector<2x8x8xbf16> -> vector<8x8x8xbf16>
    "tpu.trace_start"() <{level = 10 : i32, message = "bqd,bkd->bqk"}> : () -> ()
    %cst_11 = arith.constant dense<0.000000e+00> : vector<8x8x8xf32>
    %37 = tpu.matmul %26, %31, %cst_11 {dimension_numbers = #tpu.dot_dimension_numbers<[2], [2], [1], [1], [0, 0, 0, 1, 1, 1], [0], [0]>} : vector<8x8x8xbf16>, vector<8x8x8xbf16>, vector<8x8x8xf32> -> vector<8x8x8xf32>
    "tpu.trace_stop"() : () -> ()
    %cst_12 = arith.constant 0.353553385 : f32
    %38 = vector.broadcast %cst_12 : f32 to vector<8x8x8xf32>
    %39 = arith.mulf %37, %38 : vector<8x8x8xf32>
    %cst_13 = arith.constant dense<0xFF800000> : vector<8x8xf32>
    %40 = vector.multi_reduction <maximumf>, %39, %cst_13 [2] : vector<8x8x8xf32> to vector<8x8xf32>
    %41 = vector.shape_cast %40 : vector<8x8xf32> to vector<8x8x1xf32>
    %42 = vector.broadcast %41 : vector<8x8x1xf32> to vector<8x8x8xf32>
    %43 = arith.subf %39, %42 : vector<8x8x8xf32>
    %44 = math.exp %43 : vector<8x8x8xf32>
    %cst_14 = arith.constant dense<0.000000e+00> : vector<8x8xf32>
    %45 = vector.multi_reduction <add>, %44, %cst_14 [2] : vector<8x8x8xf32> to vector<8x8xf32>
    %46 = vector.shape_cast %45 : vector<8x8xf32> to vector<8x8x1xf32>
    %47 = tpu.reciprocal %46 {approx = true} : vector<8x8x1xf32> -> vector<8x8x1xf32>
    %48 = vector.broadcast %47 : vector<8x8x1xf32> to vector<8x8x8xf32>
    %49 = arith.mulf %44, %48 : vector<8x8x8xf32>
    %50 = arith.truncf %49 : vector<8x8x8xf32> to vector<8x8x8xbf16>
    "tpu.trace_start"() <{level = 10 : i32, message = "bqk,bkd->bqd"}> : () -> ()
    %cst_15 = arith.constant dense<0.000000e+00> : vector<8x8x8xf32>
    %51 = tpu.matmul %50, %36, %cst_15 {dimension_numbers = #tpu.dot_dimension_numbers<[2], [1], [1], [2], [0, 0, 0, 1, 1, 2], [0], [0]>} : vector<8x8x8xbf16>, vector<8x8x8xbf16>, vector<8x8x8xf32> -> vector<8x8x8xf32>
    "tpu.trace_stop"() : () -> ()
    %52 = vector.extract_strided_slice %51 {offsets = [0, 0, 0], sizes = [2, 8, 8], strides = [1, 1, 1]} : vector<8x8x8xf32> to vector<2x8x8xf32>
    %53 = vector.extract_strided_slice %51 {offsets = [2, 0, 0], sizes = [2, 8, 8], strides = [1, 1, 1]} : vector<8x8x8xf32> to vector<2x8x8xf32>
    %54 = vector.extract_strided_slice %51 {offsets = [4, 0, 0], sizes = [2, 8, 8], strides = [1, 1, 1]} : vector<8x8x8xf32> to vector<2x8x8xf32>
    %55 = vector.extract_strided_slice %51 {offsets = [6, 0, 0], sizes = [2, 8, 8], strides = [1, 1, 1]} : vector<8x8x8xf32> to vector<2x8x8xf32>
    %56 = tpu.concatenate %52, %53, %54, %55 in 2 : vector<2x8x8xf32>, vector<2x8x8xf32>, vector<2x8x8xf32>, vector<2x8x8xf32> -> vector<2x8x32xf32>
    %57 = vector.shape_cast %56 : vector<2x8x32xf32> to vector<16x32xf32>
    %58 = arith.truncf %57 : vector<16x32xf32> to vector<16x32xbf16>
    %c0_16 = arith.constant 0 : index
    %c0_17 = arith.constant 0 : index
    %c0_18 = arith.constant 0 : index
    %59 = vector.load %arg6[%c0_16, %c0_17, %c0_18] : memref<1x32x32xbf16, #tpu.memory_space<vmem>>, vector<1x32x32xbf16>
    %60 = vector.shape_cast %59 : vector<1x32x32xbf16> to vector<32x32xbf16>
    %cst_19 = arith.constant dense<0.000000e+00> : vector<16x32xf32>
    %61 = tpu.matmul %58, %60, %cst_19 {dimension_numbers = #tpu.dot_dimension_numbers<[1], [0], [0], [1], [0, 0, 1, 1], [], []>} : vector<16x32xbf16>, vector<32x32xbf16>, vector<16x32xf32> -> vector<16x32xf32>
    %62 = vector.broadcast %6 : vector<1x32xf32> to vector<16x32xf32>
    %63 = arith.addf %61, %62 : vector<16x32xf32>
    %64 = arith.addf %3, %63 : vector<16x32xf32>
    %cst_20 = arith.constant dense<0.000000e+00> : vector<16xf32>
    %65 = vector.multi_reduction <add>, %64, %cst_20 [1] : vector<16x32xf32> to vector<16xf32>
    %66 = vector.shape_cast %65 : vector<16xf32> to vector<16x1xf32>
    %cst_21 = arith.constant 3.200000e+01 : f32
    %67 = vector.broadcast %cst_21 : f32 to vector<16x1xf32>
    %68 = arith.divf %66, %67 : vector<16x1xf32>
    %69 = vector.broadcast %68 : vector<16x1xf32> to vector<16x32xf32>
    %70 = arith.subf %64, %69 : vector<16x32xf32>
    %71 = arith.mulf %70, %70 : vector<16x32xf32>
    %cst_22 = arith.constant dense<0.000000e+00> : vector<16xf32>
    %72 = vector.multi_reduction <add>, %71, %cst_22 [1] : vector<16x32xf32> to vector<16xf32>
    %73 = vector.shape_cast %72 : vector<16xf32> to vector<16x1xf32>
    %cst_23 = arith.constant 3.200000e+01 : f32
    %74 = vector.broadcast %cst_23 : f32 to vector<16x1xf32>
    %75 = arith.divf %73, %74 : vector<16x1xf32>
    %76 = vector.broadcast %68 : vector<16x1xf32> to vector<16x32xf32>
    %77 = arith.subf %64, %76 : vector<16x32xf32>
    %cst_24 = arith.constant 9.99999974E-6 : f32
    %78 = vector.broadcast %cst_24 : f32 to vector<16x1xf32>
    %79 = arith.addf %75, %78 : vector<16x1xf32>
    %80 = math.rsqrt %79 : vector<16x1xf32>
    %81 = vector.broadcast %80 : vector<16x1xf32> to vector<16x32xf32>
    %82 = arith.mulf %77, %81 : vector<16x32xf32>
    %83 = vector.broadcast %8 : vector<1x32xf32> to vector<16x32xf32>
    %84 = arith.mulf %82, %83 : vector<16x32xf32>
    %85 = vector.broadcast %9 : vector<1x32xf32> to vector<16x32xf32>
    %86 = arith.addf %84, %85 : vector<16x32xf32>
    %87 = arith.truncf %86 : vector<16x32xf32> to vector<16x32xbf16>
    %c0_25 = arith.constant 0 : index
    %c0_26 = arith.constant 0 : index
    %c0_27 = arith.constant 0 : index
    %88 = vector.load %arg7[%c0_25, %c0_26, %c0_27] : memref<1x32x64xbf16, #tpu.memory_space<vmem>>, vector<1x32x64xbf16>
    %89 = vector.shape_cast %88 : vector<1x32x64xbf16> to vector<32x64xbf16>
    %cst_28 = arith.constant dense<0.000000e+00> : vector<16x64xf32>
    %90 = tpu.matmul %87, %89, %cst_28 {dimension_numbers = #tpu.dot_dimension_numbers<[1], [0], [0], [1], [0, 0, 1, 1], [], []>} : vector<16x32xbf16>, vector<32x64xbf16>, vector<16x64xf32> -> vector<16x64xf32>
    %c0_29 = arith.constant 0 : index
    %c0_30 = arith.constant 0 : index
    %c0_31 = arith.constant 0 : index
    %91 = vector.load %arg8[%c0_29, %c0_30, %c0_31] : memref<1x1x64xf32, #tpu.memory_space<vmem>>, vector<1x1x64xf32>
    %92 = vector.shape_cast %91 : vector<1x1x64xf32> to vector<1x64xf32>
    %93 = vector.broadcast %92 : vector<1x64xf32> to vector<16x64xf32>
    %94 = arith.addf %90, %93 : vector<16x64xf32>
    %cst_32 = arith.constant 5.000000e-01 : f32
    %95 = vector.broadcast %cst_32 : f32 to vector<16x64xf32>
    %96 = arith.mulf %95, %94 : vector<16x64xf32>
    %cst_33 = arith.constant 4.471500e-02 : f32
    %97 = vector.broadcast %cst_33 : f32 to vector<16x64xf32>
    %98 = arith.mulf %97, %94 : vector<16x64xf32>
    %99 = arith.mulf %98, %94 : vector<16x64xf32>
    %100 = arith.mulf %99, %94 : vector<16x64xf32>
    %101 = arith.addf %94, %100 : vector<16x64xf32>
    %cst_34 = arith.constant 0.797884583 : f32
    %102 = vector.broadcast %cst_34 : f32 to vector<16x64xf32>
    %103 = arith.mulf %102, %101 : vector<16x64xf32>
    %104 = math.tanh %103 : vector<16x64xf32>
    %cst_35 = arith.constant 1.000000e+00 : f32
    %105 = vector.broadcast %cst_35 : f32 to vector<16x64xf32>
    %106 = arith.addf %105, %104 : vector<16x64xf32>
    %107 = arith.mulf %96, %106 : vector<16x64xf32>
    %108 = arith.truncf %107 : vector<16x64xf32> to vector<16x64xbf16>
    %c0_36 = arith.constant 0 : index
    %c0_37 = arith.constant 0 : index
    %c0_38 = arith.constant 0 : index
    %109 = vector.load %arg9[%c0_36, %c0_37, %c0_38] : memref<1x64x32xbf16, #tpu.memory_space<vmem>>, vector<1x64x32xbf16>
    %110 = vector.shape_cast %109 : vector<1x64x32xbf16> to vector<64x32xbf16>
    %cst_39 = arith.constant dense<0.000000e+00> : vector<16x32xf32>
    %111 = tpu.matmul %108, %110, %cst_39 {dimension_numbers = #tpu.dot_dimension_numbers<[1], [0], [0], [1], [0, 0, 1, 1], [], []>} : vector<16x64xbf16>, vector<64x32xbf16>, vector<16x32xf32> -> vector<16x32xf32>
    %112 = vector.broadcast %7 : vector<1x32xf32> to vector<16x32xf32>
    %113 = arith.addf %111, %112 : vector<16x32xf32>
    %114 = arith.addf %86, %113 : vector<16x32xf32>
    %cst_40 = arith.constant dense<0.000000e+00> : vector<16xf32>
    %115 = vector.multi_reduction <add>, %114, %cst_40 [1] : vector<16x32xf32> to vector<16xf32>
    %116 = vector.shape_cast %115 : vector<16xf32> to vector<16x1xf32>
    %cst_41 = arith.constant 3.200000e+01 : f32
    %117 = vector.broadcast %cst_41 : f32 to vector<16x1xf32>
    %118 = arith.divf %116, %117 : vector<16x1xf32>
    %119 = vector.broadcast %118 : vector<16x1xf32> to vector<16x32xf32>
    %120 = arith.subf %114, %119 : vector<16x32xf32>
    %121 = arith.mulf %120, %120 : vector<16x32xf32>
    %cst_42 = arith.constant dense<0.000000e+00> : vector<16xf32>
    %122 = vector.multi_reduction <add>, %121, %cst_42 [1] : vector<16x32xf32> to vector<16xf32>
    %123 = vector.shape_cast %122 : vector<16xf32> to vector<16x1xf32>
    %cst_43 = arith.constant 3.200000e+01 : f32
    %124 = vector.broadcast %cst_43 : f32 to vector<16x1xf32>
    %125 = arith.divf %123, %124 : vector<16x1xf32>
    %126 = vector.broadcast %118 : vector<16x1xf32> to vector<16x32xf32>
    %127 = arith.subf %114, %126 : vector<16x32xf32>
    %cst_44 = arith.constant 9.99999974E-6 : f32
    %128 = vector.broadcast %cst_44 : f32 to vector<16x1xf32>
    %129 = arith.addf %125, %128 : vector<16x1xf32>
    %130 = math.rsqrt %129 : vector<16x1xf32>
    %131 = vector.broadcast %130 : vector<16x1xf32> to vector<16x32xf32>
    %132 = arith.mulf %127, %131 : vector<16x32xf32>
    %133 = vector.broadcast %10 : vector<1x32xf32> to vector<16x32xf32>
    %134 = arith.mulf %132, %133 : vector<16x32xf32>
    %135 = vector.broadcast %11 : vector<1x32xf32> to vector<16x32xf32>
    %136 = arith.addf %134, %135 : vector<16x32xf32>
    %c0_45 = arith.constant 0 : index
    %c0_46 = arith.constant 0 : index
    %137 = vector.load %arg12[%c0_45, %c0_46] : memref<16x32xf32, #tpu.memory_space<vmem>>, vector<16x32xf32>
    tpu.vector_store %arg12[%c0_45, %c0_46], %136 {strides = array<i32>} : memref<16x32xf32, #tpu.memory_space<vmem>>, vector<16x32xf32>,
    %c1_i32 = arith.constant 1 : i32
    %138 = arith.cmpi eq, %arg1, %c1_i32 : i32
    %139 = arith.extui %138 : i1 to i32
    %c0_i32_47 = arith.constant 0 : i32
    %140 = arith.cmpi ne, %139, %c0_i32_47 : i32
    scf.if %140 {
      %c0_48 = arith.constant 0 : index
      %c0_49 = arith.constant 0 : index
      %141 = vector.load %arg11[%c0_48, %c0_49] : memref<16x32xf32, #tpu.memory_space<vmem>>, vector<16x32xf32>
      tpu.vector_store %arg11[%c0_48, %c0_49], %136 {strides = array<i32>} : memref<16x32xf32, #tpu.memory_space<vmem>>, vector<16x32xf32>,
    } else {
    }
    return
  }
  func.func @transform_0(%arg0: i32, %arg1: i32) -> (i32, i32) {
    %c0_i32 = arith.constant 0 : i32
    %c0_i32_0 = arith.constant 0 : i32
    return %arg0, %c0_i32 : i32, i32
  }
  func.func @transform_1(%arg0: i32, %arg1: i32) -> (i32, i32) {
    %c0_i32 = arith.constant 0 : i32
    %c0_i32_0 = arith.constant 0 : i32
    %c0_i32_1 = arith.constant 0 : i32
    return %c0_i32, %c0_i32_0 : i32, i32
  }
  func.func @transform_2(%arg0: i32, %arg1: i32) -> (i32, i32, i32) {
    %c0_i32 = arith.constant 0 : i32
    %c0_i32_0 = arith.constant 0 : i32
    %c0_i32_1 = arith.constant 0 : i32
    return %arg1, %c0_i32, %c0_i32_0 : i32, i32, i32
  }
  func.func @transform_3(%arg0: i32, %arg1: i32) -> (i32, i32, i32) {
    %c0_i32 = arith.constant 0 : i32
    %c0_i32_0 = arith.constant 0 : i32
    %c0_i32_1 = arith.constant 0 : i32
    return %arg1, %c0_i32, %c0_i32_0 : i32, i32, i32
  }
  func.func @transform_4(%arg0: i32, %arg1: i32) -> (i32, i32, i32) {
    %c0_i32 = arith.constant 0 : i32
    %c0_i32_0 = arith.constant 0 : i32
    %c0_i32_1 = arith.constant 0 : i32
    return %arg1, %c0_i32, %c0_i32_0 : i32, i32, i32
  }
  func.func @transform_5(%arg0: i32, %arg1: i32) -> (i32, i32, i32) {
    %c0_i32 = arith.constant 0 : i32
    %c0_i32_0 = arith.constant 0 : i32
    %c0_i32_1 = arith.constant 0 : i32
    return %arg1, %c0_i32, %c0_i32_0 : i32, i32, i32
  }
  func.func @transform_6(%arg0: i32, %arg1: i32) -> (i32, i32, i32) {
    %c0_i32 = arith.constant 0 : i32
    %c0_i32_0 = arith.constant 0 : i32
    %c0_i32_1 = arith.constant 0 : i32
    return %arg1, %c0_i32, %c0_i32_0 : i32, i32, i32
  }
  func.func @transform_7(%arg0: i32, %arg1: i32) -> (i32, i32, i32) {
    %c0_i32 = arith.constant 0 : i32
    %c0_i32_0 = arith.constant 0 : i32
    %c0_i32_1 = arith.constant 0 : i32
    return %arg1, %c0_i32, %c0_i32_0 : i32, i32, i32
  }
  func.func @transform_8(%arg0: i32, %arg1: i32) -> (i32, i32, i32) {
    %c0_i32 = arith.constant 0 : i32
    %c0_i32_0 = arith.constant 0 : i32
    %c0_i32_1 = arith.constant 0 : i32
    return %arg1, %c0_i32, %c0_i32_0 : i32, i32, i32
  }
  func.func @transform_9(%arg0: i32, %arg1: i32) -> (i32, i32) {
    %c0_i32 = arith.constant 0 : i32
    %c0_i32_0 = arith.constant 0 : i32
    return %arg0, %c0_i32 : i32, i32
  }
}

</mosaic_0001>

<bundles_post_ra>
// kernel: tpu_custom_call.1
= control target key start
LH: loop header
LB: loop body
LE: loop exit
PB: predicated region body
PF: predicated region fallthrough
CT: control target
= control target key end

     0   :  { %s2833_s0 = inlined_call_operand.vmem [shape: f32[16,32], index: 0, kind: input, shape index: {}]   ;;  %s2834_s1 = inlined_call_operand.vmem [shape: f32[2,32], index: 1, kind: input, shape index: {}]   ;;  %s2835_s2 = inlined_call_operand.vmem [shape: bf16[2,32,96], index: 2, kind: input, shape index: {}]   ;;  %s2836_s3 = inlined_call_operand.vmem [shape: f32[2,1,96], index: 3, kind: input, shape index: {}]   ;;  %s2837_s4 = inlined_call_operand.vmem [shape: bf16[2,32,32], index: 4, kind: input, shape index: {}]   ;;  %s2838_s5 = inlined_call_operand.vmem [shape: bf16[2,32,64], index: 5, kind: input, shape index: {}]   ;;  %s2839_s6 = inlined_call_operand.vmem [shape: f32[2,1,64], index: 6, kind: input, shape index: {}]   ;;  %s2840_s7 = inlined_call_operand.vmem [shape: bf16[2,64,32], index: 7, kind: input, shape index: {}]   ;;  %s2841_s8 = inlined_call_operand.vmem [shape: f32[2,6,32], index: 8, kind: input, shape index: {}]   ;;  %s2842_s9 = inlined_call_operand.hbm [shape: f32[16,32], index: 9, kind: output, shape index: {}]  }
   0x1   :  { %2843 = sst [smem:[#allocation6_spill]] %s2835_s2 }
   0x2   :  { %14 = vsyncpa [#allocation4], 0  ;;  %s2465_s30 = smov 0   ;;  %s2467_s10 = smov 0  }
   0x3   :  { %s2469_s11 = smov 0  }
   0x4 LB: > { %s29_s13 = sadd.s32 1, %s2397_s10  ;;  %p1992_p1 = scmp.ge.s32.totalorder %s2401_s11, 1  ;;  %s2401_s11 = sphi %s2469_s11, %s20_s11   ;;  %s2397_s10 = sphi %s2467_s10, %s2849_s10   ;;  %s2393_s30 = sphi %s2465_s30, %s2848_s30  }
   0x5   : > { %p30_p0 = scmp.ge.s32.totalorder %s29_s13, 2  ;;  %p366_p2 = scmp.lt.s32.totalorder %s2401_s11, 3 }
   0x7   : > { %s2851_s13 = smov (%p30_p0, %s29_s13), 0  ;;  %p367_p3 = pnand %p1992_p1, %p366_p2 }
   0x8   : > { %p433_p4 = scmp.lt.s32.totalorder (!%p367_p3), %s2393_s30, 1  ;;  %s2844_s2 = sld [smem:[#allocation6_spill]] (!%p367_p3) }
   0x9   : > { %370 = sbr.rel (%p367_p3) target bundleno = 3065 (0xbf9), region = 56  ;;  %p2002_p5 = scmp.ne.s32.totalorder (!%p367_p3), %s2393_s30, 0 }
  0x10   : > { %s2488_s14 = scalar_select %p433_p4, %s2393_s30, 1 }
  0x11   : > { %468 = sbr.rel (%p2002_p5) target bundleno = 336 (0x150), region = 60  ;;  %v469_v0 = vld [vmem:[%s2833_s0] sm:$0xff] (!%p2002_p5)  ;;  %vm473_vm0 = vcmask (!%p2002_p5), 261120   ;;  %v470_v1 = vld [vmem:[%s2833_s0 + $0x8] sm:$0xff] (!%p2002_p5) }
  0x12   : > { %s2050_s15 = sshll.u32 %s2488_s14, 4  ;;  %s453_s16 = scalar_lea.vmem %s2839_s6, %s2488_s14  ;;  %v474_v2 = vsel (!%p2002_p5), %vm473_vm0, %v469_v0, 0.0  ;;  %v477_v3 = vsel (!%p2002_p5), %vm473_vm0, %v470_v1, 0.0  ;;  %v2003_v21 = vld [vmem:[%s2834_s1] ss:$0 sm:$0xff] (!%p2002_p5) }
  0x13   : > { %s2498_s21 = scalar_lea.vmem %s2844_s2, %s2050_s15  ;;  %s2503_s24 = scalar_lea.vmem %s2837_s4, %s2050_s15  ;;  %475 = vadd.xlane.f32.xlu0 (!%p2002_p5), %v474_v2  ;;  %v2004_v23 = vld [vmem:[%s2834_s1 + $0x1] ss:$0 sm:$0xff] (!%p2002_p5) }
  0x14   : > { %s2508_s27 = scalar_lea.vmem %s2838_s5, %s2050_s15  ;;  %s2053_s17 = sshll.u32 %s2488_s14, 5 }
  0x15   : > { %s2001_s12 = sshll.u32 %s2488_s14, 3  ;;  %s2519_s20 = scalar_lea.vmem %s2840_s7, %s2053_s17 }
  0x16   : > { %s2524_s23 = scalar_lea.vmem %s2841_s8, %s2001_s12 }
  0x17   : > { %478 = vadd.xlane.f32.xlu0 (!%p2002_p5), %v477_v3 }
  0xa0   : > { %v476_v4 = vpop.xlane.xlu0 %475 }
  0xa1   : > { %v481_v5 = vmul.f32 0.03125, %v476_v4 }
  0xa3   : > { %v483_v6 = vsub.f32 %v469_v0, %v481_v5 }
  0xa4   : > { %v479_v7 = vpop.xlane.xlu0 %478 }
  0xa5   : > { %v482_v8 = vmul.f32 0.03125, %v479_v7  ;;  %v485_v9 = vmul.f32 %v483_v6, %v483_v6 }
  0xa7   : > { %v484_v10 = vsub.f32 %v470_v1, %v482_v8  ;;  %v487_v11 = vsel %vm473_vm0, %v485_v9, 0.0 }
  0xa8   : > { %488 = vadd.xlane.f32.xlu1 %v487_v11 }
  0xa9   : > { %v486_v12 = vmul.f32 %v484_v10, %v484_v10 }
  0xab   : > { %v490_v13 = vsel %vm473_vm0, %v486_v12, 0.0 }
  0xac   : > { %491 = vadd.xlane.f32.xlu1 %v490_v13 }
 0x135   : > { %v489_v14 = vpop.xlane.xlu1 %488 }
 0x136   : > { %v493_v15 = vmul.f32 0.03125, %v489_v14 }
 0x138   : > { %v495_v16 = vadd.f32 1e-05, %v493_v15 }
 0x139   : > { %v492_v17 = vpop.xlane.xlu1 %491 }
 0x13a   : > { %2276 = vrsqrt.f32 %v495_v16  ;;  %v494_v18 = vmul.f32 0.03125, %v492_v17 }
 0x13c   : > { %v496_v19 = vadd.f32 1e-05, %v494_v18 }
 0x13e   : > { %2278 = vrsqrt.f32 %v496_v19 }
 0x144   : > { %v2277_v20 = vpop.eup %2276 }
 0x145   : > { %v499_v22 = vmul.f32 %v2277_v20, %v483_v6 }
 0x147   : > { %v505_v24 = vmul.f32 %v2003_v21, %v499_v22 }
 0x148   : > { %v2279_v25 = vpop.eup %2278 }
 0x149   : > { %v511_v26 = vadd.f32 %v2004_v23, %v505_v24  ;;  %v500_v27 = vmul.f32 %v2279_v25, %v484_v10 }
 0x14b   : > { %513 = vst.msk [vmem:[#allocation2] sm:$0xff] %vm473_vm0, %v511_v26  ;;  %v506_v28 = vmul.f32 %v2003_v21, %v500_v27 }
 0x14d   : > { %v512_v29 = vadd.f32 %v2004_v23, %v506_v28 }
 0x14f   : > { %514 = vst.msk [vmem:[#allocation2 + $0x8] sm:$0xff] %vm473_vm0, %v512_v29 }
 0x150 PF: > { %v2295_v30 = vld [vmem:[%s2498_s21] sm:$0xff]   ;;  %v2403_v31 = vmov 0.0   ;;  %v2296_v32 = vld [vmem:[%s2498_s21 + $0x8] sm:$0xff]   ;;  %vm2404_vm1 = vmmov 0   ;;  %vm542_vm2 = vcmask 261120   ;;  %s2845_s19 = scalar_lea.vmem %s2836_s3, %s2488_s14  ;;  %s2405_s22 = smov 112  }
 0x151   : > { %2102 = vmatprep.subr.bf16.mxu0 %v2403_v31  ;;  %2110 = vmatprep.subr.bf16.mxu1 %v2403_v31  ;;  %v2005_v36 = vld [vmem:[%s2845_s19] ss:$0 sm:$0xff]  ;;  %s2406_s15 = smov 120   ;;  %s2407_s25 = smov 104   ;;  %vm607_vm3 = vcmask 64512   ;;  %vm1111_vm4 = vcmask 1043456  }
 0x152   : > { %2103 = vmatpush3.bf16.msra.mxu0 %v2295_v30  ;;  %2106 = vmatprep.mubr.msk.bf16.mxu0 %vm2404_vm1, %v2403_v31  ;;  %v2551_v33 = vld [vmem:[#allocation2] sm:$0xff]  ;;  %s2408_s26 = smov 96   ;;  %s2409_s28 = smov 64   ;;  %vm1517_vm5 = vcmask 130048   ;;  %vm1520_vm6 = vcmask 195584   ;;  %vm1752_vm7 = vcmask 523264  }
 0x153   : > { %2104 = vmatprep.subr.bf16.mxu0 %v2403_v31  ;;  %2112 = vmatprep.mubr.msk.bf16.mxu1 %vm2404_vm1, %v2403_v31  ;;  %s2410_s2 = smov 8   ;;  %s2411_s12 = smov 16  }
 0x154   : > { %s2412_s18 = smov 24   ;;  %p2045_p6 = scmp.ne.s32.totalorder %s2393_s30, 1 }
 0x156   : > { %v2553_v34 = vld [vmem:[#allocation2 + $0x8] sm:$0xff]  ;;  %2105 = vmatpush3.bf16.msra.mxu0 %v2296_v32 }
 0x157   : > { %v518_v35 = vpack.c.bf16 %v2553_v34, %v2551_v33  ;;  %2116 = vmatprep.subr.bf16.mxu0 %v2403_v31 }
 0x159   : > { %2107 = vmatmul.mubr.msk.bf16.vlgmr.msra.gmra.mrb[0].mxu0 %vm542_vm2, %v518_v35 }
 0x15a   : > { %2118 = vmatprep.mubr.msk.bf16.mxu0 %vm2404_vm1, %v2403_v31 }
 0x22c   : > { %v580_v37 = vpop.f32.mrb[0].mxu0 }
 0x22d   : > { %v581_v38 = vadd.f32 %v2005_v36, %v580_v37  ;;  %v2108_v39 = vpop.f32.mrb[1].mxu0 }
 0x22e   : > { %v583_v40 = vpop.f32.mrb[2].mxu0 }
 0x22f   : > { %v2054_v41 = vpack.c.bf16 %v581_v38, %v581_v38  ;;  %v584_v42 = vadd.f32 %v2005_v36, %v583_v40  ;;  %v2109_v43 = vpop.f32.mrb[3].mxu0 }
 0x231   : > { %597 = vrot.lane.b32.xlu1 %v2054_v41, %s2405_s22  ;;  %593 = vrot.lane.b32.xlu0 %v2054_v41, %s2406_s15  ;;  %v2569_v44 = vpack.c.bf16 %v584_v42, %v584_v42 }
 0x235   : > { %599 = vrot.lane.b32.xlu1 %v2569_v44, %s2405_s22  ;;  %595 = vrot.lane.b32.xlu0 %v2569_v44, %s2406_s15 }
 0x239   : > { %603 = vrot.lane.b32.xlu1 %v2569_v44, %s2407_s25  ;;  %601 = vrot.lane.b32.xlu0 %v2054_v41, %s2407_s25 }
 0x23d   : > { %654 = vrot.lane.b32.xlu1 %v2569_v44, %s2408_s26  ;;  %605 = vrot.lane.b32.xlu0 %v2054_v41, %s2408_s26 }
 0x2a3   : > { %v598_v45 = vpop.permute.xlu1 %597  ;;  %v594_v46 = vpop.permute.xlu0 %593 }
 0x2a4   : > { %v2575_v47 = vcombine.low %v594_v46, %v594_v46  ;;  %v2578_v50 = vcombine.low %v598_v45, %v598_v45 }
 0x2a6   : > { %704 = vrot.lane.b32.xlu0 %v2575_v47, %s2408_s26 }
 0x2a7   : > { %v600_v48 = vpop.permute.xlu1 %599  ;;  %v596_v49 = vpop.permute.xlu0 %595 }
 0x2a8   : > { %v2580_v51 = vcombine.low %v596_v49, %v596_v49  ;;  %v2584_v54 = vcombine.low %v600_v48, %v600_v48 }
 0x2aa   : > { %804 = vrot.lane.b32.xlu0 %v2578_v50, %s2408_s26  ;;  %754 = vrot.lane.b32.xlu1 %v2580_v51, %s2408_s26 }
 0x2ab   : > { %v604_v52 = vpop.permute.xlu1 %603  ;;  %v602_v53 = vpop.permute.xlu0 %601 }
 0x2ac   : > { %v2586_v55 = vcombine.low %v602_v53, %v602_v53  ;;  %v2590_v58 = vcombine.low %v604_v52, %v604_v52 }
 0x2ae   : > { %854 = vrot.lane.b32.xlu1 %v2584_v54, %s2408_s26  ;;  %904 = vrot.lane.b32.xlu0 %v2586_v55, %s2408_s26 }
 0x2af   : > { %v655_v56 = vpop.permute.xlu1 %654  ;;  %v606_v57 = vpop.permute.xlu0 %605 }
 0x2b0   : > { %v660_v59 = vsel %vm607_vm3, %v655_v56, 0  ;;  %v612_v60 = vsel %vm607_vm3, %v606_v57, 0 }
 0x2b1   : > { %2111 = vmatpush3.bf16.xpose.msra.mxu1 %v612_v60  ;;  %2117 = vmatpush3.bf16.xpose.msra.mxu0 %v660_v59 }
 0x2b2   : > { %954 = vrot.lane.b32.xlu1 %v2590_v58, %s2408_s26  ;;  %2122 = vmatprep.subr.bf16.mxu1 %v2403_v31 }
 0x2b3   : > { %2128 = vmatprep.subr.bf16.mxu0 %v2403_v31 }
 0x2b6   : > { %1106 = vrot.lane.b32.xlu1 %v2054_v41, %s2409_s28 }
 0x2b8   : > { %2113 = vmatmul.mubr.msk.bf16.vlgmr.msra.gmra.mrb[0].mxu1 %vm607_vm3, %v2054_v41  ;;  %2119 = vmatmul.mubr.msk.bf16.vlgmr.msra.gmra.mrb[4].mxu0 %vm607_vm3, %v2569_v44 }
 0x2b9   : > { %2124 = vmatprep.mubr.msk.bf16.mxu1 %vm2404_vm1, %v2403_v31  ;;  %2130 = vmatprep.mubr.msk.bf16.mxu0 %vm2404_vm1, %v2403_v31 }
 0x318   : > { %v705_v61 = vpop.permute.xlu0 %704 }
 0x319   : > { %v710_v62 = vsel %vm607_vm3, %v705_v61, 0 }
 0x31a   : > { %2123 = vmatpush3.bf16.xpose.msra.mxu1 %v710_v62 }
 0x31b   : > { %2134 = vmatprep.subr.bf16.mxu1 %v2403_v31 }
 0x31c   : > { %v755_v63 = vpop.permute.xlu1 %754  ;;  %v805_v1 = vpop.permute.xlu0 %804 }
 0x31d   : > { %v760_v0 = vsel %vm607_vm3, %v755_v63, 0  ;;  %v810_v2 = vsel %vm607_vm3, %v805_v1, 0 }
 0x31e   : > { %2129 = vmatpush3.bf16.xpose.msra.mxu0 %v760_v0 }
 0x31f   : > { %2140 = vmatprep.subr.bf16.mxu0 %v2403_v31 }
 0x320   : > { %v855_v3 = vpop.permute.xlu1 %854  ;;  %v905_v5 = vpop.permute.xlu0 %904 }
 0x321   : > { %2125 = vmatmul.mubr.msk.bf16.vlgmr.msra.gmra.mrb[4].mxu1 %vm607_vm3, %v594_v46  ;;  %v860_v4 = vsel %vm607_vm3, %v855_v3, 0  ;;  %v910_v7 = vsel %vm607_vm3, %v905_v5, 0 }
 0x322   : > { %2135 = vmatpush3.bf16.xpose.msra.mxu1 %v810_v2  ;;  %2136 = vmatprep.mubr.msk.bf16.mxu1 %vm2404_vm1, %v2403_v31 }
 0x323   : > { %2146 = vmatprep.subr.bf16.mxu1 %v2403_v31 }
 0x324   : > { %v955_v6 = vpop.permute.xlu1 %954 }
 0x325   : > { %2131 = vmatmul.mubr.msk.bf16.vlgmr.msra.gmra.mrb[8].mxu0 %vm607_vm3, %v596_v49  ;;  %v960_v8 = vsel %vm607_vm3, %v955_v6, 0 }
 0x326   : > { %2141 = vmatpush3.bf16.xpose.msra.mxu0 %v860_v4  ;;  %2142 = vmatprep.mubr.msk.bf16.mxu0 %vm2404_vm1, %v2403_v31 }
 0x327   : > { %2152 = vmatprep.subr.bf16.mxu0 %v2403_v31 }
 0x328   : > { %v1107_v9 = vpop.permute.xlu1 %1106 }
 0x329   : > { %2137 = vmatmul.mubr.msk.bf16.vlgmr.msra.gmra.mrb[8].mxu1 %vm607_vm3, %v598_v45  ;;  %v1113_v10 = vsel %vm1111_vm4, %v1107_v9, 0 }
 0x32a   : > { %2147 = vmatpush3.bf16.xpose.msra.mxu1 %v910_v7  ;;  %2148 = vmatprep.mubr.msk.bf16.mxu1 %vm2404_vm1, %v2403_v31 }
 0x32b   : > { %2158 = vmatprep.subr.bf16.mxu1 %v2403_v31 }
 0x32d   : > { %2143 = vmatmul.mubr.msk.bf16.vlgmr.msra.gmra.mrb[12].mxu0 %vm607_vm3, %v600_v48 }
 0x32e   : > { %2153 = vmatpush3.bf16.xpose.msra.mxu0 %v960_v8  ;;  %2154 = vmatprep.mubr.msk.bf16.mxu0 %vm2404_vm1, %v2403_v31 }
 0x32f   : > { %2164 = vmatprep.subr.bf16.mxu0 %v2403_v31 }
 0x331   : > { %2149 = vmatmul.mubr.msk.bf16.vlgmr.msra.gmra.mrb[12].mxu1 %vm607_vm3, %v602_v53 }
 0x332   : > { %2159 = vmatpush3.bf16.msra.mxu1 %v1113_v10  ;;  %2160 = vmatprep.mubr.msk.bf16.mxu1 %vm2404_vm1, %v2403_v31 }
 0x333   : > { %2170 = vmatprep.subr.bf16.mxu1 %v2403_v31 }
 0x335   : > { %2155 = vmatmul.mubr.msk.bf16.vlgmr.msra.gmra.mrb[16].mxu0 %vm607_vm3, %v604_v52 }
 0x336   : > { %2166 = vmatprep.mubr.msk.bf16.mxu0 %vm2404_vm1, %v2403_v31 }
 0x38b   : > { %v648_v11 = vpop.f32.mrb[0].mxu1  ;;  %v696_v12 = vpop.f32.mrb[4].mxu0 }
 0x38c   : > { %v1002_v13 = vmul.f32 0.35355338, %v648_v11  ;;  %v1003_v14 = vmul.f32 0.35355338, %v696_v12  ;;  %v2114_v15 = vpop.f32.mrb[1].mxu1  ;;  %v2120_v16 = vpop.f32.mrb[5].mxu0 }
 0x38d   : > { %v651_v17 = vpop.f32.mrb[2].mxu1  ;;  %v699_v18 = vpop.f32.mrb[6].mxu0 }
 0x38e   : > { %v2115_v19 = vpop.f32.mrb[3].mxu1  ;;  %v2121_v20 = vpop.f32.mrb[7].mxu0  ;;  %v1010_v21 = vsel %vm607_vm3, %v1002_v13, -inf  ;;  %v1013_v22 = vsel %vm607_vm3, %v1003_v14, -inf }
 0x38f   : > { %1011 = vmax.xlane.f32.xlu0 %v1010_v21  ;;  %1014 = vmax.xlane.f32.xlu1 %v1013_v22 }
 0x3f4   : > { %v746_v23 = vpop.f32.mrb[4].mxu1 }
 0x3f5   : > { %v1004_v24 = vmul.f32 0.35355338, %v746_v23  ;;  %v2126_v25 = vpop.f32.mrb[5].mxu1 }
 0x3f6   : > { %v749_v26 = vpop.f32.mrb[6].mxu1 }
 0x3f7   : > { %v2127_v27 = vpop.f32.mrb[7].mxu1  ;;  %v1016_v28 = vsel %vm607_vm3, %v1004_v24, -inf }
 0x3f8   : > { %1017 = vmax.xlane.f32.xlu0 %v1016_v28  ;;  %v796_v29 = vpop.f32.mrb[8].mxu0 }
 0x3f9   : > { %v1005_v30 = vmul.f32 0.35355338, %v796_v29  ;;  %v2132_v32 = vpop.f32.mrb[9].mxu0 }
 0x3fa   : > { %v799_v35 = vpop.f32.mrb[10].mxu0 }
 0x3fb   : > { %v2133_v36 = vpop.f32.mrb[11].mxu0  ;;  %v1019_v37 = vsel %vm607_vm3, %v1005_v30, -inf }
 0x3fc   : > { %v846_v38 = vpop.f32.mrb[8].mxu1  ;;  %1020 = vmax.xlane.f32.xlu0 %v1019_v37 }
 0x3fd   : > { %v2641_v39 = vmul.f32 0.35355338, %v846_v38  ;;  %v2138_v40 = vpop.f32.mrb[9].mxu1 }
 0x3fe   : > { %v849_v41 = vpop.f32.mrb[10].mxu1 }
 0x3ff   : > { %v2139_v42 = vpop.f32.mrb[11].mxu1  ;;  %v1022_v43 = vsel %vm607_vm3, %v2641_v39, -inf }
 0x400   : > { %1023 = vmax.xlane.f32.xlu1 %v1022_v43  ;;  %v896_v45 = vpop.f32.mrb[12].mxu0 }
 0x401   : > { %v2645_v46 = vmul.f32 0.35355338, %v896_v45  ;;  %v2144_v48 = vpop.f32.mrb[13].mxu0 }
 0x402   : > { %v899_v49 = vpop.f32.mrb[14].mxu0 }
 0x403   : > { %v2145_v52 = vpop.f32.mrb[15].mxu0  ;;  %v1025_v53 = vsel %vm607_vm3, %v2645_v46, -inf }
 0x404   : > { %v946_v56 = vpop.f32.mrb[12].mxu1  ;;  %1026 = vmax.xlane.f32.xlu0 %v1025_v53 }
 0x405   : > { %v1008_v57 = vmul.f32 0.35355338, %v946_v56  ;;  %v2150_v59 = vpop.f32.mrb[13].mxu1 }
 0x406   : > { %v949_v60 = vpop.f32.mrb[14].mxu1 }
 0x407   : > { %v2151_v61 = vpop.f32.mrb[15].mxu1  ;;  %v1028_v62 = vsel %vm607_vm3, %v1008_v57, -inf }
 0x408   : > { %1029 = vmax.xlane.f32.xlu1 %v1028_v62  ;;  %v996_v63 = vpop.f32.mrb[16].mxu0 }
 0x409   : > { %v1009_v0 = vmul.f32 0.35355338, %v996_v63  ;;  %v2156_v1 = vpop.f32.mrb[17].mxu0 }
 0x40a   : > { %v999_v2 = vpop.f32.mrb[18].mxu0 }
 0x40b   : > { %v2157_v3 = vpop.f32.mrb[19].mxu0  ;;  %v1031_v4 = vsel %vm607_vm3, %v1009_v0, -inf }
 0x40c   : > { %1032 = vmax.xlane.f32.xlu0 %v1031_v4 }
 0x419   : > { %1203 = vrot.lane.b32.xlu1 %v2575_v47, %s2409_s28 }
 0x41c   : > { %v1012_v5 = vpop.xlane.xlu0 %1011  ;;  %v1015_v6 = vpop.xlane.xlu1 %1014 }
 0x41d   : > { %1251 = vrot.lane.b32.xlu1 %v2580_v51, %s2409_s28  ;;  %v1034_v7 = vsub.f32 %v1002_v13, %v1012_v5  ;;  %v1035_v8 = vsub.f32 %v1003_v14, %v1015_v6 }
 0x41f   : > { %v1042_v9 = vmul.f32 1.442695, %v1034_v7  ;;  %v1044_v10 = vmul.f32 1.442695, %v1035_v8 }
 0x421   : > { %2305 = vpow2.f32 %v1042_v9 }
 0x422   : > { %1155 = vrot.lane.b32.xlu0 %v2569_v44, %s2409_s28  ;;  %2307 = vpow2.f32 %v1044_v10 }
 0x42b   : > { %v2306_v11 = vpop.eup %2305 }
 0x42c   : > { %v2308_v12 = vpop.eup %2307  ;;  %v1058_v15 = vsel %vm607_vm3, %v2306_v11, 0.0 }
 0x42d   : > { %v1061_v47 = vsel %vm607_vm3, %v2308_v12, 0.0 }
 0x441   : > { %1059 = vadd.xlane.f32.xlu1 %v1058_v15  ;;  %1062 = vadd.xlane.f32.xlu0 %v1061_v47 }
 0x485   : > { %v1018_v51 = vpop.xlane.xlu0 %1017 }
 0x486   : > { %v1036_v16 = vsub.f32 %v1004_v24, %v1018_v51 }
 0x488   : > { %v1046_v17 = vmul.f32 1.442695, %v1036_v16 }
 0x489   : > { %v1021_v44 = vpop.xlane.xlu0 %1020 }
 0x48a   : > { %2309 = vpow2.f32 %v1046_v17  ;;  %v1037_v18 = vsub.f32 %v1005_v30, %v1021_v44 }
 0x48c   : > { %v1048_v13 = vmul.f32 1.442695, %v1037_v18 }
 0x48d   : > { %v1024_v26 = vpop.xlane.xlu1 %1023 }
 0x48e   : > { %2311 = vpow2.f32 %v1048_v13  ;;  %v1038_v27 = vsub.f32 %v2641_v39, %v1024_v26 }
 0x490   : > { %v1050_v30 = vmul.f32 1.442695, %v1038_v27 }
 0x491   : > { %v1027_v19 = vpop.xlane.xlu0 %1026 }
 0x492   : > { %v1039_v29 = vsub.f32 %v2645_v46, %v1027_v19  ;;  %2313 = vpow2.f32 %v1050_v30 }
 0x494   : > { %v2659_v14 = vpop.eup %2309  ;;  %v1052_v35 = vmul.f32 1.442695, %v1039_v29 }
 0x495   : > { %v1064_v20 = vsel %vm607_vm3, %v2659_v14, 0.0  ;;  %v1030_v28 = vpop.xlane.xlu1 %1029 }
 0x496   : > { %1065 = vadd.xlane.f32.xlu1 %v1064_v20  ;;  %v1040_v32 = vsub.f32 %v1008_v57, %v1030_v28  ;;  %2315 = vpow2.f32 %v1052_v35 }
 0x498   : > { %v2663_v21 = vpop.eup %2311  ;;  %v1054_v36 = vmul.f32 1.442695, %v1040_v32 }
 0x499   : > { %v1033_v22 = vpop.xlane.xlu0 %1032  ;;  %v1067_v23 = vsel %vm607_vm3, %v2663_v21, 0.0  ;;  %v1204_v40 = vpop.permute.xlu1 %1203 }
 0x49a   : > { %1068 = vadd.xlane.f32.xlu0 %v1067_v23  ;;  %v1041_v37 = vsub.f32 %v1009_v0, %v1033_v22  ;;  %2317 = vpow2.f32 %v1054_v36  ;;  %v1209_v62 = vsel %vm1111_vm4, %v1204_v40, 0 }
 0x49c   : > { %v1056_v38 = vmul.f32 1.442695, %v1041_v37 }
 0x49d   : > { %v1156_v24 = vpop.permute.xlu0 %1155  ;;  %v1252_v41 = vpop.permute.xlu1 %1251 }
 0x49e   : > { %v1161_v25 = vsel %vm1111_vm4, %v1156_v24, 0  ;;  %2319 = vpow2.f32 %v1056_v38  ;;  %v1257_v63 = vsel %vm1111_vm4, %v1252_v41, 0 }
 0x49f   : > { %2165 = vmatpush3.bf16.msra.mxu0 %v1161_v25 }
 0x4a0   : > { %2176 = vmatprep.subr.bf16.mxu0 %v2403_v31 }
 0x4a7   : > { %1347 = vrot.lane.b32.xlu1 %v2584_v54, %s2409_s28  ;;  %v2675_v54 = vpop.eup %2313 }
 0x4a8   : > { %v1070_v39 = vsel %vm607_vm3, %v2675_v54, 0.0 }
 0x4b0   : > { %1299 = vrot.lane.b32.xlu0 %v2578_v50, %s2409_s28  ;;  %v2677_v50 = vpop.eup %2315 }
 0x4b1   : > { %v2681_v42 = vpop.eup %2317  ;;  %v1073_v48 = vsel %vm607_vm3, %v2677_v50, 0.0 }
 0x4b2   : > { %v1076_v46 = vsel %vm607_vm3, %v2681_v42, 0.0  ;;  %v2687_v49 = vpop.eup %2319 }
 0x4b3   : > { %v1079_v52 = vsel %vm607_vm3, %v2687_v49, 0.0 }
 0x4cb   : > { %1071 = vadd.xlane.f32.xlu1 %v1070_v39 }
 0x4ce   : > { %v1060_v43 = vpop.xlane.xlu1 %1059  ;;  %v1063_v45 = vpop.xlane.xlu0 %1062 }
 0x4cf   : > { %2321 = vrcp.f32 %v1060_v43  ;;  %1077 = vadd.xlane.f32.xlu1 %v1076_v46  ;;  %1074 = vadd.xlane.f32.xlu0 %v1073_v48  ;;  %v2297_v46 = vld [vmem:[%s2503_s24] sm:$0xff]  }
 0x4d0   : > { %2323 = vrcp.f32 %v1063_v45 }
 0x4d3   : > { %1080 = vadd.xlane.f32.xlu0 %v1079_v52 }
 0x4d9   : > { %v2322_v53 = vpop.eup %2321 }
 0x4da   : > { %v2324_v56 = vpop.eup %2323  ;;  %v1090_v57 = vmul.f32 %v2322_v53, %v2306_v11 }
 0x4db   : > { %v1091_v59 = vmul.f32 %v2324_v56, %v2308_v12  ;;  %v2298_v56 = vld [vmem:[%s2503_s24 + $0x8] sm:$0xff]  }
 0x4dc   : > { %v1098_v60 = vpack.c.bf16 %v1090_v57, %v1090_v57 }
 0x4dd   : > { %v1099_v61 = vpack.c.bf16 %v1091_v59, %v1091_v59 }
 0x4de   : > { %2161 = vmatmul.mubr.msk.bf16.vlgmr.msra.gmra.mrb[16].mxu1 %vm607_vm3, %v1098_v60 }
 0x4df   : > { %2167 = vmatmul.mubr.msk.bf16.vlgmr.msra.gmra.mrb[20].mxu0 %vm607_vm3, %v1099_v61  ;;  %2171 = vmatpush3.bf16.msra.mxu1 %v1209_v62 }
 0x4e0   : > { %2177 = vmatpush3.bf16.msra.mxu0 %v1257_v63  ;;  %1443 = vrot.lane.b32.xlu1 %v2590_v58, %s2409_s28 }
 0x4e1   : > { %2172 = vmatprep.mubr.msk.bf16.mxu1 %vm2404_vm1, %v2403_v31  ;;  %2182 = vmatprep.subr.bf16.mxu1 %v2403_v31 }
 0x4e2   : > { %2178 = vmatprep.mubr.msk.bf16.mxu0 %vm2404_vm1, %v2403_v31  ;;  %2188 = vmatprep.subr.bf16.mxu0 %v2403_v31 }
 0x4e9   : > { %1395 = vrot.lane.b32.xlu0 %v2586_v55, %s2409_s28 }
 0x523   : > { %v1066_v0 = vpop.xlane.xlu1 %1065 }
 0x524   : > { %2325 = vrcp.f32 %v1066_v0 }
 0x527   : > { %v1069_v1 = vpop.xlane.xlu0 %1068  ;;  %v1348_v8 = vpop.permute.xlu1 %1347 }
 0x528   : > { %2327 = vrcp.f32 %v1069_v1  ;;  %v1353_v9 = vsel %vm1111_vm4, %v1348_v8, 0 }
 0x52b   : > { %v1300_v3 = vpop.permute.xlu0 %1299 }
 0x52c   : > { %v1305_v7 = vsel %vm1111_vm4, %v1300_v3, 0 }
 0x52e   : > { %v2326_v2 = vpop.eup %2325 }
 0x52f   : > { %v1092_v58 = vmul.f32 %v2326_v2, %v2659_v14 }
 0x531   : > { %v1100_v4 = vpack.c.bf16 %v1092_v58, %v1092_v58 }
 0x532   : > { %v2328_v5 = vpop.eup %2327 }
 0x533   : > { %v1093_v6 = vmul.f32 %v2328_v5, %v2663_v21  ;;  %2173 = vmatmul.mubr.msk.bf16.vlgmr.msra.gmra.mrb[20].mxu1 %vm607_vm3, %v1100_v4 }
 0x534   : > { %2183 = vmatpush3.bf16.msra.mxu1 %v1305_v7  ;;  %2184 = vmatprep.mubr.msk.bf16.mxu1 %vm2404_vm1, %v2403_v31 }
 0x535   : > { %v1101_v55 = vpack.c.bf16 %v1093_v6, %v1093_v6  ;;  %2194 = vmatprep.subr.bf16.mxu1 %v2403_v31 }
 0x537   : > { %2179 = vmatmul.mubr.msk.bf16.vlgmr.msra.gmra.mrb[24].mxu0 %vm607_vm3, %v1101_v55 }
 0x538   : > { %2189 = vmatpush3.bf16.msra.mxu0 %v1353_v9  ;;  %2190 = vmatprep.mubr.msk.bf16.mxu0 %vm2404_vm1, %v2403_v31 }
 0x539   : > { %2200 = vmatprep.subr.bf16.mxu0 %v2403_v31 }
 0x558   : > { %v1072_v10 = vpop.xlane.xlu1 %1071 }
 0x559   : > { %2329 = vrcp.f32 %v1072_v10 }
 0x55c   : > { %v1078_v11 = vpop.xlane.xlu1 %1077  ;;  %v1075_v12 = vpop.xlane.xlu0 %1074 }
 0x55d   : > { %2331 = vrcp.f32 %v1078_v11 }
 0x55e   : > { %2333 = vrcp.f32 %v1075_v12 }
 0x560   : > { %v1081_v15 = vpop.xlane.xlu0 %1080  ;;  %v1444_v20 = vpop.permute.xlu1 %1443 }
 0x561   : > { %2335 = vrcp.f32 %v1081_v15  ;;  %v1449_v23 = vsel %vm1111_vm4, %v1444_v20, 0 }
 0x563   : > { %v2330_v47 = vpop.eup %2329 }
 0x564   : > { %v1094_v51 = vmul.f32 %v2330_v47, %v2675_v54  ;;  %v1396_v16 = vpop.permute.xlu0 %1395 }
 0x565   : > { %v1401_v13 = vsel %vm1111_vm4, %v1396_v16, 0 }
 0x566   : > { %v1102_v17 = vpack.c.bf16 %v1094_v51, %v1094_v51 }
 0x567   : > { %v2332_v44 = vpop.eup %2331 }
 0x568   : > { %v2334_v18 = vpop.eup %2333  ;;  %2185 = vmatmul.mubr.msk.bf16.vlgmr.msra.gmra.mrb[24].mxu1 %vm607_vm3, %v1102_v17  ;;  %v1096_v19 = vmul.f32 %v2332_v44, %v2681_v42 }
 0x569   : > { %v1095_v14 = vmul.f32 %v2334_v18, %v2677_v50  ;;  %2195 = vmatpush3.bf16.msra.mxu1 %v1401_v13  ;;  %2196 = vmatprep.mubr.msk.bf16.mxu1 %vm2404_vm1, %v2403_v31 }
 0x56a   : > { %2206 = vmatprep.subr.bf16.mxu1 %v2403_v31  ;;  %v1104_v24 = vpack.c.bf16 %v1096_v19, %v1096_v19  ;;  %v1528_v19 = vlaneseq }
 0x56b   : > { %v1103_v21 = vpack.c.bf16 %v1095_v14, %v1095_v14  ;;  %v2336_v22 = vpop.eup %2335 }
 0x56c   : > { %v1097_v25 = vmul.f32 %v2336_v22, %v2687_v49  ;;  %v2747_v20 = vshrl.u32 %v1528_v19, 7  ;;  %v2751_v22 = vld [vmem:[%s2524_s23] sm:$0x3f] }
 0x56d   : > { %2191 = vmatmul.mubr.msk.bf16.vlgmr.msra.gmra.mrb[28].mxu0 %vm607_vm3, %v1103_v21 }
 0x56e   : > { %2201 = vmatpush3.bf16.msra.mxu0 %v1449_v23  ;;  %2202 = vmatprep.mubr.msk.bf16.mxu0 %vm2404_vm1, %v2403_v31  ;;  %v1105_v26 = vpack.c.bf16 %v1097_v25, %v1097_v25  ;;  %v1530_v21 = vsub.s32 0, %v2747_v20 }
 0x56f   : > { %2214 = vmatprep.subr.bf16.mxu0 %v2403_v31 }
 0x570   : > { %2197 = vmatmul.mubr.msk.bf16.vlgmr.msra.gmra.mrb[28].mxu1 %vm607_vm3, %v1104_v24  ;;  %v1531_v23 = vrot.slane %v2751_v22, %v1530_v21 }
 0x571   : > { %2210 = vmatprep.mubr.msk.bf16.mxu1 %vm2404_vm1, %v2403_v31  ;;  %2207 = vmatpush3.bf16.msra.mxu1 %v2297_v46 }
 0x572   : > { %2208 = vmatprep.subr.bf16.mxu1 %v2403_v31 }
 0x575   : > { %2203 = vmatmul.mubr.msk.bf16.vlgmr.msra.gmra.mrb[32].mxu0 %vm607_vm3, %v1105_v26  ;;  %2209 = vmatpush3.bf16.msra.mxu1 %v2298_v56 }
 0x576   : > { %2218 = vmatprep.mubr.msk.bf16.mxu0 %vm2404_vm1, %v2403_v31  ;;  %2222 = vmatprep.subr.bf16.mxu1 %v2403_v31 }
 0x5b1   : > { %v1149_v27 = vpop.f32.mrb[16].mxu1 }
 0x5b2   : > { %v1197_v28 = vpop.f32.mrb[20].mxu0  ;;  %v2162_v29 = vpop.f32.mrb[17].mxu1 }
 0x5b3   : > { %v2168_v30 = vpop.f32.mrb[21].mxu0  ;;  %v1152_v32 = vpop.f32.mrb[18].mxu1 }
 0x5b4   : > { %v1200_v35 = vpop.f32.mrb[22].mxu0  ;;  %v2163_v36 = vpop.f32.mrb[19].mxu1 }
 0x5b5   : > { %v2169_v37 = vpop.f32.mrb[23].mxu0 }
 0x606   : > { %v1245_v38 = vpop.f32.mrb[20].mxu1 }
 0x607   : > { %v2174_v40 = vpop.f32.mrb[21].mxu1 }
 0x608   : > { %v1248_v54 = vpop.f32.mrb[22].mxu1 }
 0x609   : > { %v2175_v50 = vpop.f32.mrb[23].mxu1 }
 0x60a   : > { %v1293_v41 = vpop.f32.mrb[24].mxu0 }
 0x60b   : > { %v2280_v39 = vpack.i.bf16 %v1293_v41, %v1245_v38  ;;  %v2180_v42 = vpop.f32.mrb[25].mxu0 }
 0x60c   : > { %v1296_v43 = vpop.f32.mrb[26].mxu0 }
 0x60d   : > { %2281 = vrot.lane.b32.xlu0 %v2280_v39, %s2410_s2  ;;  %v2181_v45 = vpop.f32.mrb[27].mxu0 }
 0x60e   : > { %v2300_v45 = vld [vmem:[%s2508_s27 + $0x8] sm:$0xff]  }
 0x63b   : > { %v1341_v48 = vpop.f32.mrb[24].mxu1 }
 0x63c   : > { %v2186_v49 = vpop.f32.mrb[25].mxu1 }
 0x63d   : > { %v1344_v52 = vpop.f32.mrb[26].mxu1 }
 0x63e   : > { %v2187_v53 = vpop.f32.mrb[27].mxu1 }
 0x640   : > { %v1389_v57 = vpop.f32.mrb[28].mxu0 }
 0x641   : > { %v2285_v59 = vpack.i.bf16 %v1389_v57, %v1341_v48  ;;  %v2192_v60 = vpop.f32.mrb[29].mxu0  ;;  %v1619_v57 = vsub.s32 2, %v2747_v20 }
 0x642   : > { %v1392_v61 = vpop.f32.mrb[30].mxu0  ;;  %v1625_v60 = vsub.s32 3, %v2747_v20 }
 0x643   : > { %2286 = vrot.lane.b32.xlu1 %v2285_v59, %s2411_s12  ;;  %v2193_v62 = vpop.f32.mrb[31].mxu0  ;;  %v1437_v63 = vpop.f32.mrb[28].mxu1  ;;  %v1620_v59 = vrot.slane %v2751_v22, %v1619_v57 }
 0x644   : > { %v2198_v0 = vpop.f32.mrb[29].mxu1 }
 0x645   : > { %v1440_v1 = vpop.f32.mrb[30].mxu1 }
 0x646   : > { %v2199_v2 = vpop.f32.mrb[31].mxu1 }
 0x647   : > { %v1626_v2 = vrot.slane %v2751_v22, %v1625_v60 }
 0x648   : > { %v1485_v58 = vpop.f32.mrb[32].mxu0 }
 0x649   : > { %v2290_v3 = vpack.i.bf16 %v1485_v58, %v1437_v63  ;;  %v2204_v4 = vpop.f32.mrb[33].mxu0 }
 0x64a   : > { %v1488_v5 = vpop.f32.mrb[34].mxu0 }
 0x64b   : > { %2291 = vrot.lane.b32.xlu0 %v2290_v3, %s2412_s18  ;;  %v2205_v6 = vpop.f32.mrb[35].mxu0 }
 0x64c   : > { %v2301_v6 = vld [vmem:[%s2519_s20] sm:$0xff]  }
 0x67f   : > { %v2282_v7 = vpop.permute.xlu0 %2281 }
 0x680   : > { %v2284_v55 = vunpack.i.h.bf16 %v2282_v7  ;;  %v2283_v9 = vunpack.i.l.bf16 %v2282_v7  ;;  %v2302_v7 = vld [vmem:[%s2519_s20 + $0x8] sm:$0xff]  }
 0x682   : > { %v1516_v15 = vsel %vm607_vm3, %v1197_v28, %v2284_v55  ;;  %v1515_v47 = vsel %vm607_vm3, %v1149_v27, %v2283_v9  ;;  %v2304_v55 = vld [vmem:[%s2519_s20 + $0x18] sm:$0xff]   ;;  %v2036_v9 = vld [vmem:[%s453_s16] ss:$0 sm:$0xff] }
 0x6b5   : > { %v2287_v8 = vpop.permute.xlu1 %2286 }
 0x6b6   : > { %v2289_v10 = vunpack.i.h.bf16 %v2287_v8  ;;  %v2288_v11 = vunpack.i.l.bf16 %v2287_v8  ;;  %v2303_v8 = vld [vmem:[%s2519_s20 + $0x10] sm:$0xff]  }
 0x6b8   : > { %v1519_v17 = vsel %vm1517_vm5, %v1516_v15, %v2289_v10  ;;  %v1518_v44 = vsel %vm1517_vm5, %v1515_v47, %v2288_v11 }
 0x6bd   : > { %v2292_v12 = vpop.permute.xlu0 %2291 }
 0x6be   : > { %v2294_v51 = vunpack.i.h.bf16 %v2292_v12  ;;  %v2293_v16 = vunpack.i.l.bf16 %v2292_v12 }
 0x6c0   : > { %v1522_v18 = vsel %vm1520_vm6, %v1519_v17, %v2294_v51  ;;  %v1521_v13 = vsel %vm1520_vm6, %v1518_v44, %v2293_v16 }
 0x6c1   : > { %v1523_v14 = vpack.c.bf16 %v1522_v18, %v1521_v13 }
 0x6c3   : > { %2211 = vmatmul.mubr.msk.bf16.vlgmr.msra.gmra.mrb[32].mxu1 %vm542_vm2, %v1523_v14 }
 0x6c4   : > { %2230 = vmatprep.mubr.msk.bf16.mxu1 %vm2404_vm1, %v2403_v31  ;;  %2223 = vmatpush3.bf16.msra.mxu1 %v2301_v6 }
 0x6c5   : > { %2224 = vmatprep.subr.bf16.mxu1 %v2403_v31 }
 0x6c8   : > { %2225 = vmatpush3.bf16.msra.mxu1 %v2302_v7 }
 0x6c9   : > { %2226 = vmatprep.subr.bf16.mxu1 %v2403_v31 }
 0x6cc   : > { %2227 = vmatpush3.bf16.msra.mxu1 %v2303_v8 }
 0x6cd   : > { %2228 = vmatprep.subr.bf16.mxu1 %v2403_v31 }
 0x6d0   : > { %2229 = vmatpush3.bf16.msra.mxu1 %v2304_v55 }
 0x796   : > { %v1581_v24 = vpop.f32.mrb[32].mxu1 }
 0x797   : > { %v1582_v25 = vadd.f32 %v1581_v24, %v1531_v23  ;;  %v2212_v26 = vpop.f32.mrb[33].mxu1 }
 0x798   : > { %v1584_v27 = vpop.f32.mrb[34].mxu1 }
 0x799   : > { %v1585_v28 = vadd.f32 %v1584_v27, %v1531_v23  ;;  %v2213_v29 = vpop.f32.mrb[35].mxu1  ;;  %v1588_v30 = vadd.f32 %v1582_v25, %v2551_v33 }
 0x79b   : > { %v1590_v32 = vsel %vm542_vm2, %v1588_v30, 0.0  ;;  %v1589_v35 = vadd.f32 %v1585_v28, %v2553_v34  ;;  %v2299_v34 = vld [vmem:[%s2508_s27] sm:$0xff]  }
 0x79c   : > { %1591 = vadd.xlane.f32.xlu1 %v1590_v32  ;;  %2215 = vmatpush3.bf16.msra.mxu0 %v2299_v34 }
 0x79d   : > { %v1593_v36 = vsel %vm542_vm2, %v1589_v35, 0.0  ;;  %2216 = vmatprep.subr.bf16.mxu0 %v2403_v31 }
 0x79e   : > { %1594 = vadd.xlane.f32.xlu0 %v1593_v36  ;;  %v1726_v36 = vsub.s32 1, %v2747_v20 }
 0x7a0   : > { %2217 = vmatpush3.bf16.msra.mxu0 %v2300_v45 }
 0x829   : > { %v1592_v37 = vpop.xlane.xlu1 %1591 }
 0x82a   : > { %v1597_v38 = vmul.f32 0.03125, %v1592_v37  ;;  %v1727_v37 = vrot.slane %v2751_v22, %v1726_v36 }
 0x82b   : > { %v1595_v40 = vpop.xlane.xlu0 %1594 }
 0x82c   : > { %v1599_v54 = vsub.f32 %v1588_v30, %v1597_v38  ;;  %v1598_v50 = vmul.f32 0.03125, %v1595_v40 }
 0x82e   : > { %v1600_v41 = vsub.f32 %v1589_v35, %v1598_v50  ;;  %v1601_v39 = vmul.f32 %v1599_v54, %v1599_v54 }
 0x830   : > { %v1603_v42 = vsel %vm542_vm2, %v1601_v39, 0.0  ;;  %v1602_v33 = vmul.f32 %v1600_v41, %v1600_v41 }
 0x831   : > { %1604 = vadd.xlane.f32.xlu0 %v1603_v42 }
 0x832   : > { %v1606_v43 = vsel %vm542_vm2, %v1602_v33, 0.0 }
 0x833   : > { %1607 = vadd.xlane.f32.xlu1 %v1606_v43 }
 0x8be   : > { %v1605_v46 = vpop.xlane.xlu0 %1604 }
 0x8bf   : > { %v1609_v48 = vmul.f32 0.03125, %v1605_v46 }
 0x8c0   : > { %v1608_v49 = vpop.xlane.xlu1 %1607 }
 0x8c1   : > { %v1611_v52 = vadd.f32 1e-05, %v1609_v48  ;;  %v1610_v53 = vmul.f32 0.03125, %v1608_v49 }
 0x8c3   : > { %2337 = vrsqrt.f32 %v1611_v52  ;;  %v1612_v56 = vadd.f32 1e-05, %v1610_v53 }
 0x8c5   : > { %2339 = vrsqrt.f32 %v1612_v56 }
 0x8cd   : > { %v2338_v61 = vpop.eup %2337 }
 0x8ce   : > { %v1615_v62 = vmul.f32 %v2338_v61, %v1599_v54 }
 0x8cf   : > { %v2340_v63 = vpop.eup %2339 }
 0x8d0   : > { %v1621_v0 = vmul.f32 %v1620_v59, %v1615_v62  ;;  %v1616_v1 = vmul.f32 %v2340_v63, %v1600_v41 }
 0x8d2   : > { %v1622_v58 = vmul.f32 %v1620_v59, %v1616_v1  ;;  %v1627_v3 = vadd.f32 %v1626_v2, %v1621_v0 }
 0x8d4   : > { %v1628_v4 = vadd.f32 %v1626_v2, %v1622_v58  ;;  %v1827_v58 = vsub.s32 4, %v2747_v20 }
 0x8d6   : > { %v1629_v5 = vpack.c.bf16 %v1628_v4, %v1627_v3 }
 0x8d8   : > { %2219 = vmatmul.mubr.msk.bf16.vlgmr.msra.gmra.mrb[36].mxu0 %vm542_vm2, %v1629_v5 }
 0x9ab   : > { %v1690_v10 = vpop.f32.mrb[36].mxu0 }
 0x9ac   : > { %v1691_v11 = vadd.f32 %v2036_v9, %v1690_v10  ;;  %v2220_v12 = vpop.f32.mrb[37].mxu0 }
 0x9ad   : > { %v1693_v15 = vpop.f32.mrb[38].mxu0 }
 0x9ae   : > { %v1699_v47 = vmul.f32 0.044715, %v1691_v11  ;;  %v1694_v51 = vadd.f32 %v2036_v9, %v1693_v15  ;;  %v2221_v16 = vpop.f32.mrb[39].mxu0  ;;  %v1697_v27 = vmul.f32 0.5, %v1691_v11 }
 0x9b0   : > { %v1701_v17 = vmul.f32 %v1699_v47, %v1691_v11  ;;  %v1700_v44 = vmul.f32 0.044715, %v1694_v51  ;;  %v1698_v28 = vmul.f32 0.5, %v1694_v51 }
 0x9b2   : > { %v1703_v18 = vmul.f32 %v1701_v17, %v1691_v11  ;;  %v1702_v13 = vmul.f32 %v1700_v44, %v1694_v51 }
 0x9b4   : > { %v1705_v14 = vadd.f32 %v1703_v18, %v1691_v11  ;;  %v1704_v19 = vmul.f32 %v1702_v13, %v1694_v51 }
 0x9b6   : > { %v1707_v31 = vmul.f32 0.7978846, %v1705_v14  ;;  %v1706_v21 = vadd.f32 %v1704_v19, %v1694_v51 }
 0x9b8   : > { %2341 = vtanh.f32 %v1707_v31  ;;  %v1708_v23 = vmul.f32 0.7978846, %v1706_v21 }
 0x9ba   : > { %2343 = vtanh.f32 %v1708_v23 }
 0x9c2   : > { %v2342_v24 = vpop.eup %2341 }
 0x9c3   : > { %v1711_v25 = vadd.f32 1.0, %v2342_v24 }
 0x9c4   : > { %v2344_v26 = vpop.eup %2343 }
 0x9c5   : > { %v1712_v29 = vadd.f32 1.0, %v2344_v26  ;;  %v1713_v30 = vmul.f32 %v1711_v25, %v1697_v27 }
 0x9c7   : > { %v1714_v32 = vmul.f32 %v1712_v29, %v1698_v28 }
 0x9c9   : > { %v1715_v35 = vpack.c.bf16 %v1714_v32, %v1713_v30 }
 0x9cb   : > { %2231 = vmatmul.mubr.msk.bf16.vlgmr.msra.gmra.mrb[36].mxu1 %vm1752_vm7, %v1715_v35 }
 0xa9e   : > { %v1790_v38 = vpop.f32.mrb[36].mxu1 }
 0xa9f   : > { %v1791_v40 = vadd.f32 %v1790_v38, %v1727_v37  ;;  %v2232_v54 = vpop.f32.mrb[37].mxu1 }
 0xaa0   : > { %v1793_v50 = vpop.f32.mrb[38].mxu1 }
 0xaa1   : > { %v1794_v41 = vadd.f32 %v1793_v50, %v1727_v37  ;;  %v2233_v39 = vpop.f32.mrb[39].mxu1  ;;  %v1797_v42 = vadd.f32 %v1791_v40, %v1627_v3  ;;  %v1833_v3 = vsub.s32 5, %v2747_v20 }
 0xaa3   : > { %v1799_v33 = vsel %vm542_vm2, %v1797_v42, 0.0  ;;  %v1798_v43 = vadd.f32 %v1794_v41, %v1628_v4  ;;  %v1828_v4 = vrot.slane %v2751_v22, %v1827_v58  ;;  %v1834_v6 = vrot.slane %v2751_v22, %v1833_v3 }
 0xaa4   : > { %1800 = vadd.xlane.f32.xlu0 %v1799_v33 }
 0xaa5   : > { %v1802_v34 = vsel %vm542_vm2, %v1798_v43, 0.0 }
 0xaa6   : > { %1803 = vadd.xlane.f32.xlu1 %v1802_v34 }
 0xb31   : > { %v1801_v45 = vpop.xlane.xlu0 %1800 }
 0xb32   : > { %v1805_v46 = vmul.f32 0.03125, %v1801_v45 }
 0xb33   : > { %v1804_v48 = vpop.xlane.xlu1 %1803 }
 0xb34   : > { %v1807_v49 = vsub.f32 %v1797_v42, %v1805_v46  ;;  %v1806_v52 = vmul.f32 0.03125, %v1804_v48 }
 0xb36   : > { %v1808_v53 = vsub.f32 %v1798_v43, %v1806_v52  ;;  %v1809_v56 = vmul.f32 %v1807_v49, %v1807_v49 }
 0xb38   : > { %v1811_v57 = vsel %vm542_vm2, %v1809_v56, 0.0  ;;  %v1810_v59 = vmul.f32 %v1808_v53, %v1808_v53 }
 0xb39   : > { %1812 = vadd.xlane.f32.xlu0 %v1811_v57 }
 0xb3a   : > { %v1814_v60 = vsel %vm542_vm2, %v1810_v59, 0.0 }
 0xb3b   : > { %1815 = vadd.xlane.f32.xlu1 %v1814_v60 }
 0xbc6   : > { %v1813_v61 = vpop.xlane.xlu0 %1812 }
 0xbc7   : > { %v1817_v62 = vmul.f32 0.03125, %v1813_v61 }
 0xbc8   : > { %v1816_v63 = vpop.xlane.xlu1 %1815 }
 0xbc9   : > { %v1819_v0 = vadd.f32 1e-05, %v1817_v62  ;;  %v1818_v1 = vmul.f32 0.03125, %v1816_v63 }
 0xbcb   : > { %2345 = vrsqrt.f32 %v1819_v0  ;;  %v1820_v2 = vadd.f32 1e-05, %v1818_v1 }
 0xbcd   : > { %2347 = vrsqrt.f32 %v1820_v2 }
 0xbd5   : > { %v2346_v5 = vpop.eup %2345 }
 0xbd6   : > { %v1823_v7 = vmul.f32 %v2346_v5, %v1807_v49 }
 0xbd7   : > { %v2348_v8 = vpop.eup %2347 }
 0xbd8   : > { %v1829_v55 = vmul.f32 %v1828_v4, %v1823_v7  ;;  %v1824_v9 = vmul.f32 %v2348_v8, %v1808_v53  ;;  %1842 = sbr.rel (%p2045_p6) target bundleno = 3039 (0xbdf), region = 64 }
 0xbda   : > { %v1835_v10 = vadd.f32 %v1834_v6, %v1829_v55  ;;  %v1830_v11 = vmul.f32 %v1828_v4, %v1824_v9 }
 0xbdc   : > { %1837 = vst.msk [vmem:[#allocation2] sm:$0xff] %vm542_vm2, %v1835_v10  ;;  %v1836_v12 = vadd.f32 %v1834_v6, %v1830_v11  ;;  %1843 = vst.msk [vmem:[#allocation3] sm:$0xff] (!%p2045_p6), %vm542_vm2, %v1835_v10 }
 0xbde   : > { %1838 = vst.msk [vmem:[#allocation2 + $0x8] sm:$0xff] %vm542_vm2, %v1836_v12  ;;  %1844 = vst.msk [vmem:[#allocation3 + $0x8] sm:$0xff] (!%p2045_p6), %vm542_vm2, %v1836_v12 }
 0xbdf PF: > { %s2846_s14 = sadd.s32 4294967295, %s2401_s11   ;;  %s2413_s20 = smov [#allocation3]  }
 0xbe0   : > { %p2797_p7 = scmp.eq.s32.totalorder %s2846_s14, 1  ;;  %s1854_s23 = sshll.u32 %s2413_s20, 4  ;;  %s1855_s23 = int_to_ptr.vmem [resolvable:$true] %s1854_s23 }
 0xbe1   : > { %s2349_s29 = scalar_lea.vmem %s1855_s23, 256  ;;  %p2356_p11 = scmp.lt.s32.totalorder %s1855_s23, %s1855_s23 }
 0xbe2   : > { %p2350_p8 = scmp.ne.s32.totalorder %s1855_s23, %s2349_s29  ;;  %p2357_p12 = scmp.lt.s32.totalorder %s2349_s29, %s2349_s29 }
 0xbe4   : > { %p2351_p9 = pnand %p2350_p8, %p2797_p7  ;;  %p2358_p13 = por %p2357_p12, %p2356_p11 }
 0xbe6   : > { %p2352_p10 = pneg %p2351_p9 }
 0xbe8   : > { %p2359_p0 = pnand %p2358_p13, %p2352_p10 }
 0xbea   : > { %2362 = shalt.err (!%p2359_p0)
}
 0xbeb   : > { %s2363_s17 = scalar_lea.hbm %s2842_s9, 256 }
 0xbec   : > { %p2364_p1 = scmp.ne.s32.totalorder %s2842_s9, %s2363_s17  ;;  %p2369_p4 = scmp.lt.u32.totalorder %s2363_s17, %s2842_s9 }
 0xbee   : > { %p2365_p2 = pnand %p2364_p1, %p2797_p7 }
 0xbf0   : > { %p2366_p3 = pneg %p2365_p2 }
 0xbf2   : > { %p2371_p5 = pnand %p2369_p4, %p2366_p3 }
 0xbf4   : > { %2374 = shalt.err (!%p2371_p5)
}
 0xbf5   : > { %s2414_s26 = smov 128  }
 0xbf6   : > { %2235 = dma.vmem_to_hbm [thread:$0]  (%p2797_p7), %s1855_s23, 256, %s2842_s9, [#allocation4], %s2414_s26, %s2414_s26, %s2410_s2  }
 0xbf7   : > { %2388 = dma.done.wait (%p2797_p7), [#allocation4], 256  }
 0xbf8   : > { %2390 = vsyncadd (%p2797_p7), [#allocation4], 4294967040 }
 0xbf9 PF: > { %s20_s11 = sadd.s32 1, %s2401_s11   ;;  %s2848_s30 = smov %s2397_s10 }
 0xbfa   : > { %p17_p6 = scmp.ge.s32.totalorder %s20_s11, 4   ;;  %s2849_s10 = smov %s2851_s13 }
 0xbfc   :  { %19 = sbr.rel (!%p17_p6) target bundleno = 4 (0x4), region = 113 }
 0xc03   :  { %1870 = vsyncpa [#allocation4], 1 }
 0xc04   :  { %1872 = vsyncpa [#allocation4 + $0x1], 1 }

</bundles_post_ra>
